<compile_context>
chip_gen: v7x
topology: tpu7x:2x2x1
jax: 0.10.0
libtpu: 0.0.40
codegen_flags: <defaults>
</compile_context>

<pallas_src>
import jax
import jax.numpy as jnp
import numpy as np
from jax.experimental import pallas as pl
from jax.experimental.pallas import tpu as pltpu


# ----------------------------- Pallas kernel ---------------------------------

def _make_kernel(tc, bt, num_layers, hidden, emb_dim):
    """tc: timesteps per chunk, bt: batch-tile rows, hidden: H, emb_dim: E."""
    H = hidden
    n_extra = num_layers - 1  # layers >= 1 each contribute (Wi, Wh, b)

    def kernel(len_sm, emb_ref, len_ref, wiT0_ref, whT0_ref, b0_ref, *args):
        # args layout:
        #   [Wi_1, Wh_1, b_1, ..., Wi_{L-1}, Wh_{L-1}, b_{L-1},
        #    wg_row, bg,  out_ref, hn_ref, cn_ref,  h_scr, c_scr]
        nw = 3 * n_extra
        layer_refs = args[:nw]
        wg_ref, bg_ref = args[nw], args[nw + 1]
        out_ref, hn_ref, cn_ref = args[nw + 2: nw + 5]
        h_scr, c_scr = args[nw + 5], args[nw + 6]

        b_idx = pl.program_id(0)          # batch tile (parallel across TCs on v7x)
        t_idx = pl.program_id(1)          # time chunk (sequential recurrence)
        n_t = pl.num_programs(1)

        # Zero initial hidden/cell state at the start of each batch tile's time loop
        # (PyTorch default when no (h0, c0) is passed).
        @pl.when(t_idx == 0)
        def _():
            h_scr[...] = jnp.zeros_like(h_scr)
            c_scr[...] = jnp.zeros_like(c_scr)

        chunk_start = t_idx * tc
        # lengths are sorted descending (pack() contract) -> the first row of this
        # batch tile carries the tile's max length; fully padded chunks are skipped.
        max_len = len_sm[b_idx * bt]

        @pl.when(chunk_start >= max_len)
        def _():
            out_ref[...] = jnp.zeros_like(out_ref)   # unpack() pads with zeros

        @pl.when(chunk_start < max_len)
        def _():
            lengths = len_ref[...]                   # (bt, 1) int32, per-row lengths

            # Layer-0 input projection for the whole chunk: one MXU call on the
            # streamed embeddings (bias folded in).  Reshape only collapses leading
            # (major) dims; lane layout is untouched.
            embs = emb_ref[...].reshape(tc * bt, emb_dim)
            gates0 = jnp.dot(embs, wiT0_ref[...],
                             preferred_element_type=jnp.float32) + b0_ref[...]

            whT0 = whT0_ref[...]
            wi = [layer_refs[3 * i][...] for i in range(n_extra)]       # (H, 4H)
            wh = [layer_refs[3 * i + 1][...] for i in range(n_extra)]   # (H, 4H)
            bb = [layer_refs[3 * i + 2][...] for i in range(n_extra)]   # (1, 4H)
            wg_row = wg_ref[...]                                        # (1, H)
            bg = bg_ref[...]                                            # (1, 1)

            # Pull recurrent state into vregs for the short in-chunk unroll.
            h = [h_scr[l] for l in range(num_layers)]
            c = [c_scr[l] for l in range(num_layers)]

            out_rows = []
            for tt in range(tc):                     # short static unroll (bounded by Tc)
                mask = (chunk_start + tt) < lengths  # (bt, 1): step within sequence
                x = None
                for l in range(num_layers):
                    if l == 0:
                        gates = gates0[tt * bt:(tt + 1) * bt] + jnp.dot(
                            h[0], whT0, preferred_element_type=jnp.float32)
                    else:
                        # Two accumulating dots -- no lane-dim concatenate.
                        gates = (jnp.dot(x, wi[l - 1],
                                         preferred_element_type=jnp.float32)
                                 + jnp.dot(h[l], wh[l - 1],
                                           preferred_element_type=jnp.float32)
                                 + bb[l - 1])

                    # Gate columns were permuted in the wrapper to [i, f, o | g]:
                    # one 3H-wide sigmoid + one H-wide tanh instead of 4 sliced EUP ops.
                    sg = jax.nn.sigmoid(gates[:, :3 * H])
                    g_g = jnp.tanh(gates[:, 3 * H:])
                    i_g = sg[:, :H]
                    f_g = sg[:, H:2 * H]
                    o_g = sg[:, 2 * H:]

                    c_new = f_g * c[l] + i_g * g_g
                    h_new = o_g * jnp.tanh(c_new)

                    # Packed-sequence semantics: freeze state past each row's length.
                    h[l] = jnp.where(mask, h_new, h[l])
                    c[l] = jnp.where(mask, c_new, c[l])
                    x = h[l]
                    # TODO(synk): inter-layer dropout skipped (dropout=0.0 / inference).
                    # TODO(synk): for L > 2, batch the LSTM wavefront (layer l @ t with
                    #             layer l-1 @ t+1) into one MXU LHS to fill the M dim.

                # gated head Linear(H, 1) + Sigmoid as VPU multiply + XLU lane reduce
                # (no width-1 MXU matmul).
                p = jax.nn.sigmoid(jnp.sum(x * wg_row, axis=-1, keepdims=True) + bg)
                out_rows.append(jnp.where(mask, x * p, 0.0))

            # Single whole-chunk store; the HBM writeback DMA is pipelined with the
            # next chunk's compute by the BlockSpec pipeline.
            # TODO(synk): pack the output lane-dense ((Tc, B*H) last-dim >= 128) once
            #             the minor-dim collapse relayout is guaranteed on all targets.
            out_ref[...] = jnp.stack(out_rows).astype(out_ref.dtype)

            for l in range(num_layers):
                h_scr[l] = h[l]
                c_scr[l] = c[l]

        # Final state written once, at the last time chunk of this batch tile.
        @pl.when(t_idx == n_t - 1)
        def _():
            hn_ref[...] = h_scr[...]
            cn_ref[...] = c_scr[...]

    return kernel


# ------------------------------- wrapper --------------------------------------

def gated_rnn_encoder_pallas(tokens, lengths, emb_table, layer_params, wg, bg,
                             *, time_chunk=4, batch_tile=8):
    """tokens (T, B) int32, lengths (B,) int32 sorted descending (pack() contract).

    layer_params: list of (wiT, whT, b) per LSTM layer, PyTorch gate order [i,f,g,o],
    wiT (in_dim, 4H), whT (H, 4H), b (1, 4H) = b_ih + b_hh.
    Returns (outputs (T, B, H), (h_n, c_n) each (L, B, H)).
    """
    T, B = tokens.shape
    E = emb_table.shape[1]
    L = len(layer_params)
    H = layer_params[0][1].shape[0]
    assert batch_tile % 8 == 0, "batch tile must fill sublanes"

    Tc = int(time_chunk)
    Bt = int(batch_tile)
    T_pad = ((T + Tc - 1) // Tc) * Tc
    B_pad = ((B + Bt - 1) // Bt) * Bt

    # --- pad batch / time (padded rows get length 0 -> zero output, frozen state) ---
    tokens_p = jnp.pad(tokens, ((0, T_pad - T), (0, B_pad - B)))
    len_i32 = lengths.astype(jnp.int32)
    len_1d = jnp.pad(len_i32, (0, B_pad - B))          # scalar-prefetch (SMEM)
    len_2d = len_1d.reshape(B_pad, 1)                  # per-row mask vector (VMEM)

    # Embedding lookup (glue, plain JAX gather).
    embs = emb_table[tokens_p]                         # (T_pad, B_pad, E) f32

    # Permute gate columns PyTorch [i, f, g, o] -> [i, f, o, g] so the kernel can run
    # one wide sigmoid + one tanh.  Pure relabeling of weight columns.
    def reorder(w):
        return jnp.concatenate(
            [w[..., :2 * H], w[..., 3 * H:4 * H], w[..., 2 * H:3 * H]], axis=-1)

    wiT0, whT0, b0 = (reorder(a) for a in layer_params[0])
    flat_layers = []
    for l in range(1, L):
        wiT, whT, b = (reorder(a) for a in layer_params[l])
        flat_layers += [wiT, whT, b]

    wg_row = wg.reshape(1, H)
    bg2d = bg.reshape(1, 1)

    def const_spec(shape):
        n = len(shape)
        return pl.BlockSpec(shape, lambda b, t, lens, _n=n: (0,) * _n)

    in_specs = [
        pl.BlockSpec((Tc, Bt, E), lambda b, t, lens: (t, b, 0)),   # streamed embeddings
        pl.BlockSpec((Bt, 1), lambda b, t, lens: (b, 0)),          # per-row lengths
        const_spec(wiT0.shape), const_spec(whT0.shape), const_spec(b0.shape),
    ]
    in_specs += [const_spec(a.shape) for a in flat_layers]
    in_specs += [const_spec(wg_row.shape), const_spec(bg2d.shape)]

    out_specs = (
        pl.BlockSpec((Tc, Bt, H), lambda b, t, lens: (t, b, 0)),   # gated outputs
        pl.BlockSpec((L, Bt, H), lambda b, t, lens: (0, b, 0)),    # h_n
        pl.BlockSpec((L, Bt, H), lambda b, t, lens: (0, b, 0)),    # c_n
    )
    out_shape = (
        jax.ShapeDtypeStruct((T_pad, B_pad, H), jnp.float32),
        jax.ShapeDtypeStruct((L, B_pad, H), jnp.float32),
        jax.ShapeDtypeStruct((L, B_pad, H), jnp.float32),
    )

    kernel = _make_kernel(Tc, Bt, L, H, E)
    grid = (B_pad // Bt, T_pad // Tc)

    outputs, h_n, c_n = pl.pallas_call(
        kernel,
        out_shape=out_shape,
        grid_spec=pltpu.PrefetchScalarGridSpec(
            num_scalar_prefetch=1,                     # lengths -> SMEM
            grid=grid,
            in_specs=in_specs,
            out_specs=out_specs,
            scratch_shapes=[pltpu.VMEM((L, Bt, H), jnp.float32),   # h state
                            pltpu.VMEM((L, Bt, H), jnp.float32)],  # c state
        ),
        compiler_params=pltpu.CompilerParams(
            # batch tiles independent -> parallel (2 TCs on v7x); time is the recurrence.
            dimension_semantics=("parallel", "arbitrary"),
            # Chunked streaming keeps residency tiny; 32 MiB is safe on v5e/v6e/v7x
            # (v7x physical VMEM is 64 MiB).  Shrink time_chunk first if this ever binds.
            vmem_limit_bytes=32 * 1024 * 1024,
        ),
    )(len_1d, embs, len_2d, wiT0, whT0, b0, *flat_layers, wg_row, bg2d)

    # TODO(synk): bf16 streaming storage for embeddings/outputs on v6e/v7x (keep f32
    #             accumulators / elementwise math) would halve HBM traffic.
    return outputs[:T, :B], (h_n[:, :B], c_n[:, :B])


# --------------------------- pure-JAX reference -------------------------------

def gated_rnn_encoder_ref(tokens, lengths, emb_table, layer_params, wg, bg):
    T, B = tokens.shape
    L = len(layer_params)
    H = layer_params[0][1].shape[0]
    hi = jax.lax.Precision.HIGHEST
    embs = emb_table[tokens]
    h = jnp.zeros((L, B, H), jnp.float32)
    c = jnp.zeros((L, B, H), jnp.float32)
    outs = []
    for t in range(T):
        mask = (t < lengths)[:, None]
        x = embs[t]
        h_list, c_list = [], []
        for l, (wiT, whT, b) in enumerate(layer_params):
            gates = jnp.dot(x, wiT, precision=hi) + jnp.dot(h[l], whT, precision=hi) + b
            i_g = jax.nn.sigmoid(gates[:, :H])
            f_g = jax.nn.sigmoid(gates[:, H:2 * H])
            g_g = jnp.tanh(gates[:, 2 * H:3 * H])
            o_g = jax.nn.sigmoid(gates[:, 3 * H:])
            cn = f_g * c[l] + i_g * g_g
            hn = o_g * jnp.tanh(cn)
            hn = jnp.where(mask, hn, h[l])
            cn = jnp.where(mask, cn, c[l])
            h_list.append(hn)
            c_list.append(cn)
            x = hn
        h = jnp.stack(h_list)
        c = jnp.stack(c_list)
        p = jax.nn.sigmoid(jnp.dot(x, wg, precision=hi) + bg)
        outs.append(jnp.where(mask, x * p, 0.0))
    return jnp.stack(outs), (h, c)


# --------------------------------- main ---------------------------------------

if __name__ == "__main__":
    # config: emb_size=32, encoder_hidden_size=32, num_layers=2, dropout=0.0
    VOCAB, E, H, L = 50, 32, 32, 2
    T, B = 8, 4

    key = jax.random.PRNGKey(0)
    keys = jax.random.split(key, 2 + 4 * L)

    scale = 1.0 / np.sqrt(H)
    emb_table = jax.random.normal(keys[0], (VOCAB, E), jnp.float32) * 0.1

    layer_params = []
    for l in range(L):
        in_dim = E if l == 0 else H
        k0, k1, k2, k3 = keys[2 + 4 * l: 6 + 4 * l]
        w_ih = jax.random.uniform(k0, (4 * H, in_dim), jnp.float32, -scale, scale)
        w_hh = jax.random.uniform(k1, (4 * H, H), jnp.float32, -scale, scale)
        b_ih = jax.random.uniform(k2, (4 * H,), jnp.float32, -scale, scale)
        b_hh = jax.random.uniform(k3, (4 * H,), jnp.float32, -scale, scale)
        # pre-transpose weights, combine biases (they are always summed)
        layer_params.append((w_ih.T, w_hh.T, (b_ih + b_hh).reshape(1, 4 * H)))

    wg = jax.random.uniform(keys[1], (1, H), jnp.float32, -scale, scale).T  # (H, 1)
    bg = jnp.zeros((1, 1), jnp.float32)

    tokens = jax.random.randint(jax.random.PRNGKey(1), (T, B), 0, VOCAB, jnp.int32)
    lengths = jnp.array([8, 7, 5, 3], jnp.int32)  # sorted descending, as pack() expects

    outputs, (h_n, c_n) = gated_rnn_encoder_pallas(
        tokens, lengths, emb_table, layer_params, wg, bg,
        time_chunk=4, batch_tile=8)
    jax.block_until_ready((outputs, h_n, c_n))

    ref_out, (ref_h, ref_c) = gated_rnn_encoder_ref(
        tokens, lengths, emb_table, layer_params, wg, bg)

    np.testing.assert_allclose(np.asarray(outputs), np.asarray(ref_out),
                               rtol=5e-2, atol=5e-3)
    np.testing.assert_allclose(np.asarray(h_n), np.asarray(ref_h),
                               rtol=5e-2, atol=5e-3)
    np.testing.assert_allclose(np.asarray(c_n), np.asarray(ref_c),
                               rtol=5e-2, atol=5e-3)

    print("KERNEL_OK")
</pallas_src>

<mosaic_0001>
module attributes {stable_mosaic.version = 11 : i64} {
  func.func @kernel(%arg0: i32, %arg1: i32, %arg2: memref<8xi32, #tpu.memory_space<smem>>, %arg3: memref<4x8x32xf32, #tpu.memory_space<vmem>>, %arg4: memref<8x1xi32, #tpu.memory_space<vmem>>, %arg5: memref<32x128xf32, #tpu.memory_space<vmem>>, %arg6: memref<32x128xf32, #tpu.memory_space<vmem>>, %arg7: memref<1x128xf32, #tpu.memory_space<vmem>>, %arg8: memref<32x128xf32, #tpu.memory_space<vmem>>, %arg9: memref<32x128xf32, #tpu.memory_space<vmem>>, %arg10: memref<1x128xf32, #tpu.memory_space<vmem>>, %arg11: memref<1x32xf32, #tpu.memory_space<vmem>>, %arg12: memref<1x1xf32, #tpu.memory_space<vmem>>, %arg13: memref<4x8x32xf32, #tpu.memory_space<vmem>>, %arg14: memref<2x8x32xf32, #tpu.memory_space<vmem>>, %arg15: memref<2x8x32xf32, #tpu.memory_space<vmem>>, %arg16: memref<2x8x32xf32, #tpu.memory_space<vmem>>, %arg17: memref<2x8x32xf32, #tpu.memory_space<vmem>>) attributes {dimension_semantics = [#tpu.dimension_semantics<parallel>, #tpu.dimension_semantics<arbitrary>], iteration_bounds = array<i64: 1, 2>, scalar_prefetch = 1 : i64, scratch_operands = 2 : i64, tpu.core_type = #tpu.core_type<tc>, window_params = [{transform_indices = @transform_0, window_bounds = array<i64: 4, 8, 32>}, {transform_indices = @transform_1, window_bounds = array<i64: 8, 1>}, {pipeline_mode = #tpu.pipeline_mode<synchronous>, transform_indices = @transform_2, window_bounds = array<i64: 32, 128>}, {pipeline_mode = #tpu.pipeline_mode<synchronous>, transform_indices = @transform_3, window_bounds = array<i64: 32, 128>}, {pipeline_mode = #tpu.pipeline_mode<synchronous>, transform_indices = @transform_4, window_bounds = array<i64: 1, 128>}, {pipeline_mode = #tpu.pipeline_mode<synchronous>, transform_indices = @transform_5, window_bounds = array<i64: 32, 128>}, {pipeline_mode = #tpu.pipeline_mode<synchronous>, transform_indices = @transform_6, window_bounds = array<i64: 32, 128>}, {pipeline_mode = #tpu.pipeline_mode<synchronous>, transform_indices = @transform_7, window_bounds = array<i64: 1, 128>}, {pipeline_mode = #tpu.pipeline_mode<synchronous>, transform_indices = @transform_8, window_bounds = array<i64: 1, 32>}, {pipeline_mode = #tpu.pipeline_mode<synchronous>, transform_indices = @transform_9, window_bounds = array<i64: 1, 1>}, {transform_indices = @transform_10, window_bounds = array<i64: 4, 8, 32>}, {transform_indices = @transform_11, window_bounds = array<i64: 2, 8, 32>}, {transform_indices = @transform_12, window_bounds = array<i64: 2, 8, 32>}]} {
    %c0_i32 = arith.constant 0 : i32
    %0 = arith.cmpi eq, %arg1, %c0_i32 : i32
    %1 = arith.extui %0 : i1 to i32
    %c0_i32_0 = arith.constant 0 : i32
    %2 = arith.cmpi ne, %1, %c0_i32_0 : i32
    scf.if %2 {
      %cst = arith.constant 0.000000e+00 : f32
      %16 = vector.broadcast %cst : f32 to vector<2x8x32xf32>
      %c0 = arith.constant 0 : index
      %c0_4 = arith.constant 0 : index
      %c0_5 = arith.constant 0 : index
      %17 = vector.load %arg16[%c0, %c0_4, %c0_5] : memref<2x8x32xf32, #tpu.memory_space<vmem>>, vector<2x8x32xf32>
      tpu.vector_store %arg16[%c0, %c0_4, %c0_5], %16 {strides = array<i32>} : memref<2x8x32xf32, #tpu.memory_space<vmem>>, vector<2x8x32xf32>,
      %cst_6 = arith.constant 0.000000e+00 : f32
      %18 = vector.broadcast %cst_6 : f32 to vector<2x8x32xf32>
      %c0_7 = arith.constant 0 : index
      %c0_8 = arith.constant 0 : index
      %c0_9 = arith.constant 0 : index
      %19 = vector.load %arg17[%c0_7, %c0_8, %c0_9] : memref<2x8x32xf32, #tpu.memory_space<vmem>>, vector<2x8x32xf32>
      tpu.vector_store %arg17[%c0_7, %c0_8, %c0_9], %18 {strides = array<i32>} : memref<2x8x32xf32, #tpu.memory_space<vmem>>, vector<2x8x32xf32>,
    } else {
    }
    %c4_i32 = arith.constant 4 : i32
    %3 = arith.muli %arg1, %c4_i32 : i32
    %c8_i32 = arith.constant 8 : i32
    %4 = arith.muli %arg0, %c8_i32 : i32
    %5 = arith.index_cast %4 : i32 to index
    %6 = memref.load %arg2[%5] : memref<8xi32, #tpu.memory_space<smem>>
    %7 = arith.cmpi sge, %3, %6 : i32
    %8 = arith.extui %7 : i1 to i32
    %c0_i32_1 = arith.constant 0 : i32
    %9 = arith.cmpi ne, %8, %c0_i32_1 : i32
    scf.if %9 {
      %cst = arith.constant 0.000000e+00 : f32
      %16 = vector.broadcast %cst : f32 to vector<4x8x32xf32>
      %c0 = arith.constant 0 : index
      %c0_4 = arith.constant 0 : index
      %c0_5 = arith.constant 0 : index
      %17 = vector.load %arg13[%c0, %c0_4, %c0_5] : memref<4x8x32xf32, #tpu.memory_space<vmem>>, vector<4x8x32xf32>
      tpu.vector_store %arg13[%c0, %c0_4, %c0_5], %16 {strides = array<i32>} : memref<4x8x32xf32, #tpu.memory_space<vmem>>, vector<4x8x32xf32>,
    } else {
    }
    %10 = arith.cmpi slt, %3, %6 : i32
    %11 = arith.extui %10 : i1 to i32
    %c0_i32_2 = arith.constant 0 : i32
    %12 = arith.cmpi ne, %11, %c0_i32_2 : i32
    scf.if %12 {
      %c0 = arith.constant 0 : index
      %c0_4 = arith.constant 0 : index
      %16 = vector.load %arg4[%c0, %c0_4] : memref<8x1xi32, #tpu.memory_space<vmem>>, vector<8x1xi32>
      %c0_5 = arith.constant 0 : index
      %c0_6 = arith.constant 0 : index
      %c0_7 = arith.constant 0 : index
      %17 = vector.load %arg3[%c0_5, %c0_6, %c0_7] : memref<4x8x32xf32, #tpu.memory_space<vmem>>, vector<4x8x32xf32>
      %18 = vector.shape_cast %17 : vector<4x8x32xf32> to vector<32x32xf32>
      %c0_8 = arith.constant 0 : index
      %c0_9 = arith.constant 0 : index
      %19 = vector.load %arg5[%c0_8, %c0_9] : memref<32x128xf32, #tpu.memory_space<vmem>>, vector<32x128xf32>
      %cst = arith.constant dense<0.000000e+00> : vector<32x128xf32>
      %20 = tpu.matmul %18, %19, %cst {dimension_numbers = #tpu.dot_dimension_numbers<[1], [0], [0], [1], [0, 0, 1, 1], [], []>} : vector<32x32xf32>, vector<32x128xf32>, vector<32x128xf32> -> vector<32x128xf32>
      %c0_10 = arith.constant 0 : index
      %c0_11 = arith.constant 0 : index
      %21 = vector.load %arg7[%c0_10, %c0_11] : memref<1x128xf32, #tpu.memory_space<vmem>>, vector<1x128xf32>
      %22 = vector.broadcast %21 : vector<1x128xf32> to vector<32x128xf32>
      %23 = arith.addf %20, %22 : vector<32x128xf32>
      %c0_12 = arith.constant 0 : index
      %c0_13 = arith.constant 0 : index
      %24 = vector.load %arg6[%c0_12, %c0_13] : memref<32x128xf32, #tpu.memory_space<vmem>>, vector<32x128xf32>
      %c0_14 = arith.constant 0 : index
      %c0_15 = arith.constant 0 : index
      %25 = vector.load %arg8[%c0_14, %c0_15] : memref<32x128xf32, #tpu.memory_space<vmem>>, vector<32x128xf32>
      %c0_16 = arith.constant 0 : index
      %c0_17 = arith.constant 0 : index
      %26 = vector.load %arg9[%c0_16, %c0_17] : memref<32x128xf32, #tpu.memory_space<vmem>>, vector<32x128xf32>
      %c0_18 = arith.constant 0 : index
      %c0_19 = arith.constant 0 : index
      %27 = vector.load %arg10[%c0_18, %c0_19] : memref<1x128xf32, #tpu.memory_space<vmem>>, vector<1x128xf32>
      %c0_20 = arith.constant 0 : index
      %c0_21 = arith.constant 0 : index
      %28 = vector.load %arg11[%c0_20, %c0_21] : memref<1x32xf32, #tpu.memory_space<vmem>>, vector<1x32xf32>
      %c0_22 = arith.constant 0 : index
      %c0_23 = arith.constant 0 : index
      %29 = vector.load %arg12[%c0_22, %c0_23] : memref<1x1xf32, #tpu.memory_space<vmem>>, vector<1x1xf32>
      %c0_24 = arith.constant 0 : index
      %c0_25 = arith.constant 0 : index
      %c0_26 = arith.constant 0 : index
      %30 = vector.load %arg16[%c0_24, %c0_25, %c0_26] : memref<2x8x32xf32, #tpu.memory_space<vmem>>, vector<1x8x32xf32>
      %31 = vector.shape_cast %30 : vector<1x8x32xf32> to vector<8x32xf32>
      %c1 = arith.constant 1 : index
      %c0_27 = arith.constant 0 : index
      %c0_28 = arith.constant 0 : index
      %32 = vector.load %arg16[%c1, %c0_27, %c0_28] : memref<2x8x32xf32, #tpu.memory_space<vmem>>, vector<1x8x32xf32>
      %33 = vector.shape_cast %32 : vector<1x8x32xf32> to vector<8x32xf32>
      %c0_29 = arith.constant 0 : index
      %c0_30 = arith.constant 0 : index
      %c0_31 = arith.constant 0 : index
      %34 = vector.load %arg17[%c0_29, %c0_30, %c0_31] : memref<2x8x32xf32, #tpu.memory_space<vmem>>, vector<1x8x32xf32>
      %35 = vector.shape_cast %34 : vector<1x8x32xf32> to vector<8x32xf32>
      %c1_32 = arith.constant 1 : index
      %c0_33 = arith.constant 0 : index
      %c0_34 = arith.constant 0 : index
      %36 = vector.load %arg17[%c1_32, %c0_33, %c0_34] : memref<2x8x32xf32, #tpu.memory_space<vmem>>, vector<1x8x32xf32>
      %37 = vector.shape_cast %36 : vector<1x8x32xf32> to vector<8x32xf32>
      %c0_i32_35 = arith.constant 0 : i32
      %38 = arith.addi %3, %c0_i32_35 : i32
      %39 = vector.broadcast %38 : i32 to vector<8x1xi32>
      %40 = arith.cmpi slt, %39, %16 : vector<8x1xi32>
      %41 = vector.extract_strided_slice %23 {offsets = [0, 0], sizes = [8, 128], strides = [1, 1]} : vector<32x128xf32> to vector<8x128xf32>
      %cst_36 = arith.constant dense<0.000000e+00> : vector<8x128xf32>
      %42 = tpu.matmul %31, %24, %cst_36 {dimension_numbers = #tpu.dot_dimension_numbers<[1], [0], [0], [1], [0, 0, 1, 1], [], []>} : vector<8x32xf32>, vector<32x128xf32>, vector<8x128xf32> -> vector<8x128xf32>
      %43 = arith.addf %41, %42 : vector<8x128xf32>
      %44 = vector.extract_strided_slice %43 {offsets = [0, 0], sizes = [8, 96], strides = [1, 1]} : vector<8x128xf32> to vector<8x96xf32>
      %45 = arith.negf %44 : vector<8x96xf32>
      %46 = math.exp %45 : vector<8x96xf32>
      %cst_37 = arith.constant 1.000000e+00 : f32
      %47 = vector.broadcast %cst_37 : f32 to vector<8x96xf32>
      %48 = arith.addf %47, %46 : vector<8x96xf32>
      %49 = arith.divf %47, %48 : vector<8x96xf32>
      %50 = vector.extract_strided_slice %43 {offsets = [0, 96], sizes = [8, 32], strides = [1, 1]} : vector<8x128xf32> to vector<8x32xf32>
      %51 = math.tanh %50 : vector<8x32xf32>
      %52 = vector.extract_strided_slice %49 {offsets = [0, 0], sizes = [8, 32], strides = [1, 1]} : vector<8x96xf32> to vector<8x32xf32>
      %53 = vector.extract_strided_slice %49 {offsets = [0, 32], sizes = [8, 32], strides = [1, 1]} : vector<8x96xf32> to vector<8x32xf32>
      %54 = vector.extract_strided_slice %49 {offsets = [0, 64], sizes = [8, 32], strides = [1, 1]} : vector<8x96xf32> to vector<8x32xf32>
      %55 = arith.mulf %53, %35 : vector<8x32xf32>
      %56 = arith.mulf %52, %51 : vector<8x32xf32>
      %57 = arith.addf %55, %56 : vector<8x32xf32>
      %58 = math.tanh %57 : vector<8x32xf32>
      %59 = arith.mulf %54, %58 : vector<8x32xf32>
      %60 = vector.shape_cast %40 : vector<8x1xi1> to vector<8x1xi1>
      %61 = vector.broadcast %60 : vector<8x1xi1> to vector<8x32xi1>
      %62 = arith.select %61, %59, %31 : vector<8x32xi1>, vector<8x32xf32>
      %63 = vector.shape_cast %40 : vector<8x1xi1> to vector<8x1xi1>
      %64 = vector.broadcast %63 : vector<8x1xi1> to vector<8x32xi1>
      %65 = arith.select %64, %57, %35 : vector<8x32xi1>, vector<8x32xf32>
      %cst_38 = arith.constant dense<0.000000e+00> : vector<8x128xf32>
      %66 = tpu.matmul %62, %25, %cst_38 {dimension_numbers = #tpu.dot_dimension_numbers<[1], [0], [0], [1], [0, 0, 1, 1], [], []>} : vector<8x32xf32>, vector<32x128xf32>, vector<8x128xf32> -> vector<8x128xf32>
      %cst_39 = arith.constant dense<0.000000e+00> : vector<8x128xf32>
      %67 = tpu.matmul %33, %26, %cst_39 {dimension_numbers = #tpu.dot_dimension_numbers<[1], [0], [0], [1], [0, 0, 1, 1], [], []>} : vector<8x32xf32>, vector<32x128xf32>, vector<8x128xf32> -> vector<8x128xf32>
      %68 = arith.addf %66, %67 : vector<8x128xf32>
      %69 = vector.broadcast %27 : vector<1x128xf32> to vector<8x128xf32>
      %70 = arith.addf %68, %69 : vector<8x128xf32>
      %71 = vector.extract_strided_slice %70 {offsets = [0, 0], sizes = [8, 96], strides = [1, 1]} : vector<8x128xf32> to vector<8x96xf32>
      %72 = arith.negf %71 : vector<8x96xf32>
      %73 = math.exp %72 : vector<8x96xf32>
      %cst_40 = arith.constant 1.000000e+00 : f32
      %74 = vector.broadcast %cst_40 : f32 to vector<8x96xf32>
      %75 = arith.addf %74, %73 : vector<8x96xf32>
      %76 = arith.divf %74, %75 : vector<8x96xf32>
      %77 = vector.extract_strided_slice %70 {offsets = [0, 96], sizes = [8, 32], strides = [1, 1]} : vector<8x128xf32> to vector<8x32xf32>
      %78 = math.tanh %77 : vector<8x32xf32>
      %79 = vector.extract_strided_slice %76 {offsets = [0, 0], sizes = [8, 32], strides = [1, 1]} : vector<8x96xf32> to vector<8x32xf32>
      %80 = vector.extract_strided_slice %76 {offsets = [0, 32], sizes = [8, 32], strides = [1, 1]} : vector<8x96xf32> to vector<8x32xf32>
      %81 = vector.extract_strided_slice %76 {offsets = [0, 64], sizes = [8, 32], strides = [1, 1]} : vector<8x96xf32> to vector<8x32xf32>
      %82 = arith.mulf %80, %37 : vector<8x32xf32>
      %83 = arith.mulf %79, %78 : vector<8x32xf32>
      %84 = arith.addf %82, %83 : vector<8x32xf32>
      %85 = math.tanh %84 : vector<8x32xf32>
      %86 = arith.mulf %81, %85 : vector<8x32xf32>
      %87 = vector.shape_cast %40 : vector<8x1xi1> to vector<8x1xi1>
      %88 = vector.broadcast %87 : vector<8x1xi1> to vector<8x32xi1>
      %89 = arith.select %88, %86, %33 : vector<8x32xi1>, vector<8x32xf32>
      %90 = vector.shape_cast %40 : vector<8x1xi1> to vector<8x1xi1>
      %91 = vector.broadcast %90 : vector<8x1xi1> to vector<8x32xi1>
      %92 = arith.select %91, %84, %37 : vector<8x32xi1>, vector<8x32xf32>
      %93 = vector.broadcast %28 : vector<1x32xf32> to vector<8x32xf32>
      %94 = arith.mulf %89, %93 : vector<8x32xf32>
      %cst_41 = arith.constant dense<0.000000e+00> : vector<8xf32>
      %95 = vector.multi_reduction <add>, %94, %cst_41 [1] : vector<8x32xf32> to vector<8xf32>
      %96 = vector.shape_cast %95 : vector<8xf32> to vector<8x1xf32>
      %97 = vector.broadcast %29 : vector<1x1xf32> to vector<8x1xf32>
      %98 = arith.addf %96, %97 : vector<8x1xf32>
      %99 = arith.negf %98 : vector<8x1xf32>
      %100 = math.exp %99 : vector<8x1xf32>
      %cst_42 = arith.constant 1.000000e+00 : f32
      %101 = vector.broadcast %cst_42 : f32 to vector<8x1xf32>
      %102 = arith.addf %101, %100 : vector<8x1xf32>
      %103 = arith.divf %101, %102 : vector<8x1xf32>
      %104 = vector.broadcast %103 : vector<8x1xf32> to vector<8x32xf32>
      %105 = arith.mulf %89, %104 : vector<8x32xf32>
      %cst_43 = arith.constant 0.000000e+00 : f32
      %106 = vector.shape_cast %40 : vector<8x1xi1> to vector<8x1xi1>
      %107 = vector.broadcast %106 : vector<8x1xi1> to vector<8x32xi1>
      %108 = vector.broadcast %cst_43 : f32 to vector<8x32xf32>
      %109 = arith.select %107, %105, %108 : vector<8x32xi1>, vector<8x32xf32>
      %c1_i32_44 = arith.constant 1 : i32
      %110 = arith.addi %3, %c1_i32_44 : i32
      %111 = vector.broadcast %110 : i32 to vector<8x1xi32>
      %112 = arith.cmpi slt, %111, %16 : vector<8x1xi32>
      %113 = vector.extract_strided_slice %23 {offsets = [8, 0], sizes = [8, 128], strides = [1, 1]} : vector<32x128xf32> to vector<8x128xf32>
      %cst_45 = arith.constant dense<0.000000e+00> : vector<8x128xf32>
      %114 = tpu.matmul %62, %24, %cst_45 {dimension_numbers = #tpu.dot_dimension_numbers<[1], [0], [0], [1], [0, 0, 1, 1], [], []>} : vector<8x32xf32>, vector<32x128xf32>, vector<8x128xf32> -> vector<8x128xf32>
      %115 = arith.addf %113, %114 : vector<8x128xf32>
      %116 = vector.extract_strided_slice %115 {offsets = [0, 0], sizes = [8, 96], strides = [1, 1]} : vector<8x128xf32> to vector<8x96xf32>
      %117 = arith.negf %116 : vector<8x96xf32>
      %118 = math.exp %117 : vector<8x96xf32>
      %cst_46 = arith.constant 1.000000e+00 : f32
      %119 = vector.broadcast %cst_46 : f32 to vector<8x96xf32>
      %120 = arith.addf %119, %118 : vector<8x96xf32>
      %121 = arith.divf %119, %120 : vector<8x96xf32>
      %122 = vector.extract_strided_slice %115 {offsets = [0, 96], sizes = [8, 32], strides = [1, 1]} : vector<8x128xf32> to vector<8x32xf32>
      %123 = math.tanh %122 : vector<8x32xf32>
      %124 = vector.extract_strided_slice %121 {offsets = [0, 0], sizes = [8, 32], strides = [1, 1]} : vector<8x96xf32> to vector<8x32xf32>
      %125 = vector.extract_strided_slice %121 {offsets = [0, 32], sizes = [8, 32], strides = [1, 1]} : vector<8x96xf32> to vector<8x32xf32>
      %126 = vector.extract_strided_slice %121 {offsets = [0, 64], sizes = [8, 32], strides = [1, 1]} : vector<8x96xf32> to vector<8x32xf32>
      %127 = arith.mulf %125, %65 : vector<8x32xf32>
      %128 = arith.mulf %124, %123 : vector<8x32xf32>
      %129 = arith.addf %127, %128 : vector<8x32xf32>
      %130 = math.tanh %129 : vector<8x32xf32>
      %131 = arith.mulf %126, %130 : vector<8x32xf32>
      %132 = vector.shape_cast %112 : vector<8x1xi1> to vector<8x1xi1>
      %133 = vector.broadcast %132 : vector<8x1xi1> to vector<8x32xi1>
      %134 = arith.select %133, %131, %62 : vector<8x32xi1>, vector<8x32xf32>
      %135 = vector.shape_cast %112 : vector<8x1xi1> to vector<8x1xi1>
      %136 = vector.broadcast %135 : vector<8x1xi1> to vector<8x32xi1>
      %137 = arith.select %136, %129, %65 : vector<8x32xi1>, vector<8x32xf32>
      %cst_47 = arith.constant dense<0.000000e+00> : vector<8x128xf32>
      %138 = tpu.matmul %134, %25, %cst_47 {dimension_numbers = #tpu.dot_dimension_numbers<[1], [0], [0], [1], [0, 0, 1, 1], [], []>} : vector<8x32xf32>, vector<32x128xf32>, vector<8x128xf32> -> vector<8x128xf32>
      %cst_48 = arith.constant dense<0.000000e+00> : vector<8x128xf32>
      %139 = tpu.matmul %89, %26, %cst_48 {dimension_numbers = #tpu.dot_dimension_numbers<[1], [0], [0], [1], [0, 0, 1, 1], [], []>} : vector<8x32xf32>, vector<32x128xf32>, vector<8x128xf32> -> vector<8x128xf32>
      %140 = arith.addf %138, %139 : vector<8x128xf32>
      %141 = vector.broadcast %27 : vector<1x128xf32> to vector<8x128xf32>
      %142 = arith.addf %140, %141 : vector<8x128xf32>
      %143 = vector.extract_strided_slice %142 {offsets = [0, 0], sizes = [8, 96], strides = [1, 1]} : vector<8x128xf32> to vector<8x96xf32>
      %144 = arith.negf %143 : vector<8x96xf32>
      %145 = math.exp %144 : vector<8x96xf32>
      %cst_49 = arith.constant 1.000000e+00 : f32
      %146 = vector.broadcast %cst_49 : f32 to vector<8x96xf32>
      %147 = arith.addf %146, %145 : vector<8x96xf32>
      %148 = arith.divf %146, %147 : vector<8x96xf32>
      %149 = vector.extract_strided_slice %142 {offsets = [0, 96], sizes = [8, 32], strides = [1, 1]} : vector<8x128xf32> to vector<8x32xf32>
      %150 = math.tanh %149 : vector<8x32xf32>
      %151 = vector.extract_strided_slice %148 {offsets = [0, 0], sizes = [8, 32], strides = [1, 1]} : vector<8x96xf32> to vector<8x32xf32>
      %152 = vector.extract_strided_slice %148 {offsets = [0, 32], sizes = [8, 32], strides = [1, 1]} : vector<8x96xf32> to vector<8x32xf32>
      %153 = vector.extract_strided_slice %148 {offsets = [0, 64], sizes = [8, 32], strides = [1, 1]} : vector<8x96xf32> to vector<8x32xf32>
      %154 = arith.mulf %152, %92 : vector<8x32xf32>
      %155 = arith.mulf %151, %150 : vector<8x32xf32>
      %156 = arith.addf %154, %155 : vector<8x32xf32>
      %157 = math.tanh %156 : vector<8x32xf32>
      %158 = arith.mulf %153, %157 : vector<8x32xf32>
      %159 = vector.shape_cast %112 : vector<8x1xi1> to vector<8x1xi1>
      %160 = vector.broadcast %159 : vector<8x1xi1> to vector<8x32xi1>
      %161 = arith.select %160, %158, %89 : vector<8x32xi1>, vector<8x32xf32>
      %162 = vector.shape_cast %112 : vector<8x1xi1> to vector<8x1xi1>
      %163 = vector.broadcast %162 : vector<8x1xi1> to vector<8x32xi1>
      %164 = arith.select %163, %156, %92 : vector<8x32xi1>, vector<8x32xf32>
      %165 = vector.broadcast %28 : vector<1x32xf32> to vector<8x32xf32>
      %166 = arith.mulf %161, %165 : vector<8x32xf32>
      %cst_50 = arith.constant dense<0.000000e+00> : vector<8xf32>
      %167 = vector.multi_reduction <add>, %166, %cst_50 [1] : vector<8x32xf32> to vector<8xf32>
      %168 = vector.shape_cast %167 : vector<8xf32> to vector<8x1xf32>
      %169 = vector.broadcast %29 : vector<1x1xf32> to vector<8x1xf32>
      %170 = arith.addf %168, %169 : vector<8x1xf32>
      %171 = arith.negf %170 : vector<8x1xf32>
      %172 = math.exp %171 : vector<8x1xf32>
      %cst_51 = arith.constant 1.000000e+00 : f32
      %173 = vector.broadcast %cst_51 : f32 to vector<8x1xf32>
      %174 = arith.addf %173, %172 : vector<8x1xf32>
      %175 = arith.divf %173, %174 : vector<8x1xf32>
      %176 = vector.broadcast %175 : vector<8x1xf32> to vector<8x32xf32>
      %177 = arith.mulf %161, %176 : vector<8x32xf32>
      %cst_52 = arith.constant 0.000000e+00 : f32
      %178 = vector.shape_cast %112 : vector<8x1xi1> to vector<8x1xi1>
      %179 = vector.broadcast %178 : vector<8x1xi1> to vector<8x32xi1>
      %180 = vector.broadcast %cst_52 : f32 to vector<8x32xf32>
      %181 = arith.select %179, %177, %180 : vector<8x32xi1>, vector<8x32xf32>
      %c2_i32 = arith.constant 2 : i32
      %182 = arith.addi %3, %c2_i32 : i32
      %183 = vector.broadcast %182 : i32 to vector<8x1xi32>
      %184 = arith.cmpi slt, %183, %16 : vector<8x1xi32>
      %185 = vector.extract_strided_slice %23 {offsets = [16, 0], sizes = [8, 128], strides = [1, 1]} : vector<32x128xf32> to vector<8x128xf32>
      %cst_53 = arith.constant dense<0.000000e+00> : vector<8x128xf32>
      %186 = tpu.matmul %134, %24, %cst_53 {dimension_numbers = #tpu.dot_dimension_numbers<[1], [0], [0], [1], [0, 0, 1, 1], [], []>} : vector<8x32xf32>, vector<32x128xf32>, vector<8x128xf32> -> vector<8x128xf32>
      %187 = arith.addf %185, %186 : vector<8x128xf32>
      %188 = vector.extract_strided_slice %187 {offsets = [0, 0], sizes = [8, 96], strides = [1, 1]} : vector<8x128xf32> to vector<8x96xf32>
      %189 = arith.negf %188 : vector<8x96xf32>
      %190 = math.exp %189 : vector<8x96xf32>
      %cst_54 = arith.constant 1.000000e+00 : f32
      %191 = vector.broadcast %cst_54 : f32 to vector<8x96xf32>
      %192 = arith.addf %191, %190 : vector<8x96xf32>
      %193 = arith.divf %191, %192 : vector<8x96xf32>
      %194 = vector.extract_strided_slice %187 {offsets = [0, 96], sizes = [8, 32], strides = [1, 1]} : vector<8x128xf32> to vector<8x32xf32>
      %195 = math.tanh %194 : vector<8x32xf32>
      %196 = vector.extract_strided_slice %193 {offsets = [0, 0], sizes = [8, 32], strides = [1, 1]} : vector<8x96xf32> to vector<8x32xf32>
      %197 = vector.extract_strided_slice %193 {offsets = [0, 32], sizes = [8, 32], strides = [1, 1]} : vector<8x96xf32> to vector<8x32xf32>
      %198 = vector.extract_strided_slice %193 {offsets = [0, 64], sizes = [8, 32], strides = [1, 1]} : vector<8x96xf32> to vector<8x32xf32>
      %199 = arith.mulf %197, %137 : vector<8x32xf32>
      %200 = arith.mulf %196, %195 : vector<8x32xf32>
      %201 = arith.addf %199, %200 : vector<8x32xf32>
      %202 = math.tanh %201 : vector<8x32xf32>
      %203 = arith.mulf %198, %202 : vector<8x32xf32>
      %204 = vector.shape_cast %184 : vector<8x1xi1> to vector<8x1xi1>
      %205 = vector.broadcast %204 : vector<8x1xi1> to vector<8x32xi1>
      %206 = arith.select %205, %203, %134 : vector<8x32xi1>, vector<8x32xf32>
      %207 = vector.shape_cast %184 : vector<8x1xi1> to vector<8x1xi1>
      %208 = vector.broadcast %207 : vector<8x1xi1> to vector<8x32xi1>
      %209 = arith.select %208, %201, %137 : vector<8x32xi1>, vector<8x32xf32>
      %cst_55 = arith.constant dense<0.000000e+00> : vector<8x128xf32>
      %210 = tpu.matmul %206, %25, %cst_55 {dimension_numbers = #tpu.dot_dimension_numbers<[1], [0], [0], [1], [0, 0, 1, 1], [], []>} : vector<8x32xf32>, vector<32x128xf32>, vector<8x128xf32> -> vector<8x128xf32>
      %cst_56 = arith.constant dense<0.000000e+00> : vector<8x128xf32>
      %211 = tpu.matmul %161, %26, %cst_56 {dimension_numbers = #tpu.dot_dimension_numbers<[1], [0], [0], [1], [0, 0, 1, 1], [], []>} : vector<8x32xf32>, vector<32x128xf32>, vector<8x128xf32> -> vector<8x128xf32>
      %212 = arith.addf %210, %211 : vector<8x128xf32>
      %213 = vector.broadcast %27 : vector<1x128xf32> to vector<8x128xf32>
      %214 = arith.addf %212, %213 : vector<8x128xf32>
      %215 = vector.extract_strided_slice %214 {offsets = [0, 0], sizes = [8, 96], strides = [1, 1]} : vector<8x128xf32> to vector<8x96xf32>
      %216 = arith.negf %215 : vector<8x96xf32>
      %217 = math.exp %216 : vector<8x96xf32>
      %cst_57 = arith.constant 1.000000e+00 : f32
      %218 = vector.broadcast %cst_57 : f32 to vector<8x96xf32>
      %219 = arith.addf %218, %217 : vector<8x96xf32>
      %220 = arith.divf %218, %219 : vector<8x96xf32>
      %221 = vector.extract_strided_slice %214 {offsets = [0, 96], sizes = [8, 32], strides = [1, 1]} : vector<8x128xf32> to vector<8x32xf32>
      %222 = math.tanh %221 : vector<8x32xf32>
      %223 = vector.extract_strided_slice %220 {offsets = [0, 0], sizes = [8, 32], strides = [1, 1]} : vector<8x96xf32> to vector<8x32xf32>
      %224 = vector.extract_strided_slice %220 {offsets = [0, 32], sizes = [8, 32], strides = [1, 1]} : vector<8x96xf32> to vector<8x32xf32>
      %225 = vector.extract_strided_slice %220 {offsets = [0, 64], sizes = [8, 32], strides = [1, 1]} : vector<8x96xf32> to vector<8x32xf32>
      %226 = arith.mulf %224, %164 : vector<8x32xf32>
      %227 = arith.mulf %223, %222 : vector<8x32xf32>
      %228 = arith.addf %226, %227 : vector<8x32xf32>
      %229 = math.tanh %228 : vector<8x32xf32>
      %230 = arith.mulf %225, %229 : vector<8x32xf32>
      %231 = vector.shape_cast %184 : vector<8x1xi1> to vector<8x1xi1>
      %232 = vector.broadcast %231 : vector<8x1xi1> to vector<8x32xi1>
      %233 = arith.select %232, %230, %161 : vector<8x32xi1>, vector<8x32xf32>
      %234 = vector.shape_cast %184 : vector<8x1xi1> to vector<8x1xi1>
      %235 = vector.broadcast %234 : vector<8x1xi1> to vector<8x32xi1>
      %236 = arith.select %235, %228, %164 : vector<8x32xi1>, vector<8x32xf32>
      %237 = vector.broadcast %28 : vector<1x32xf32> to vector<8x32xf32>
      %238 = arith.mulf %233, %237 : vector<8x32xf32>
      %cst_58 = arith.constant dense<0.000000e+00> : vector<8xf32>
      %239 = vector.multi_reduction <add>, %238, %cst_58 [1] : vector<8x32xf32> to vector<8xf32>
      %240 = vector.shape_cast %239 : vector<8xf32> to vector<8x1xf32>
      %241 = vector.broadcast %29 : vector<1x1xf32> to vector<8x1xf32>
      %242 = arith.addf %240, %241 : vector<8x1xf32>
      %243 = arith.negf %242 : vector<8x1xf32>
      %244 = math.exp %243 : vector<8x1xf32>
      %cst_59 = arith.constant 1.000000e+00 : f32
      %245 = vector.broadcast %cst_59 : f32 to vector<8x1xf32>
      %246 = arith.addf %245, %244 : vector<8x1xf32>
      %247 = arith.divf %245, %246 : vector<8x1xf32>
      %248 = vector.broadcast %247 : vector<8x1xf32> to vector<8x32xf32>
      %249 = arith.mulf %233, %248 : vector<8x32xf32>
      %cst_60 = arith.constant 0.000000e+00 : f32
      %250 = vector.shape_cast %184 : vector<8x1xi1> to vector<8x1xi1>
      %251 = vector.broadcast %250 : vector<8x1xi1> to vector<8x32xi1>
      %252 = vector.broadcast %cst_60 : f32 to vector<8x32xf32>
      %253 = arith.select %251, %249, %252 : vector<8x32xi1>, vector<8x32xf32>
      %c3_i32 = arith.constant 3 : i32
      %254 = arith.addi %3, %c3_i32 : i32
      %255 = vector.broadcast %254 : i32 to vector<8x1xi32>
      %256 = arith.cmpi slt, %255, %16 : vector<8x1xi32>
      %257 = vector.extract_strided_slice %23 {offsets = [24, 0], sizes = [8, 128], strides = [1, 1]} : vector<32x128xf32> to vector<8x128xf32>
      %cst_61 = arith.constant dense<0.000000e+00> : vector<8x128xf32>
      %258 = tpu.matmul %206, %24, %cst_61 {dimension_numbers = #tpu.dot_dimension_numbers<[1], [0], [0], [1], [0, 0, 1, 1], [], []>} : vector<8x32xf32>, vector<32x128xf32>, vector<8x128xf32> -> vector<8x128xf32>
      %259 = arith.addf %257, %258 : vector<8x128xf32>
      %260 = vector.extract_strided_slice %259 {offsets = [0, 0], sizes = [8, 96], strides = [1, 1]} : vector<8x128xf32> to vector<8x96xf32>
      %261 = arith.negf %260 : vector<8x96xf32>
      %262 = math.exp %261 : vector<8x96xf32>
      %cst_62 = arith.constant 1.000000e+00 : f32
      %263 = vector.broadcast %cst_62 : f32 to vector<8x96xf32>
      %264 = arith.addf %263, %262 : vector<8x96xf32>
      %265 = arith.divf %263, %264 : vector<8x96xf32>
      %266 = vector.extract_strided_slice %259 {offsets = [0, 96], sizes = [8, 32], strides = [1, 1]} : vector<8x128xf32> to vector<8x32xf32>
      %267 = math.tanh %266 : vector<8x32xf32>
      %268 = vector.extract_strided_slice %265 {offsets = [0, 0], sizes = [8, 32], strides = [1, 1]} : vector<8x96xf32> to vector<8x32xf32>
      %269 = vector.extract_strided_slice %265 {offsets = [0, 32], sizes = [8, 32], strides = [1, 1]} : vector<8x96xf32> to vector<8x32xf32>
      %270 = vector.extract_strided_slice %265 {offsets = [0, 64], sizes = [8, 32], strides = [1, 1]} : vector<8x96xf32> to vector<8x32xf32>
      %271 = arith.mulf %269, %209 : vector<8x32xf32>
      %272 = arith.mulf %268, %267 : vector<8x32xf32>
      %273 = arith.addf %271, %272 : vector<8x32xf32>
      %274 = math.tanh %273 : vector<8x32xf32>
      %275 = arith.mulf %270, %274 : vector<8x32xf32>
      %276 = vector.shape_cast %256 : vector<8x1xi1> to vector<8x1xi1>
      %277 = vector.broadcast %276 : vector<8x1xi1> to vector<8x32xi1>
      %278 = arith.select %277, %275, %206 : vector<8x32xi1>, vector<8x32xf32>
      %279 = vector.shape_cast %256 : vector<8x1xi1> to vector<8x1xi1>
      %280 = vector.broadcast %279 : vector<8x1xi1> to vector<8x32xi1>
      %281 = arith.select %280, %273, %209 : vector<8x32xi1>, vector<8x32xf32>
      %cst_63 = arith.constant dense<0.000000e+00> : vector<8x128xf32>
      %282 = tpu.matmul %278, %25, %cst_63 {dimension_numbers = #tpu.dot_dimension_numbers<[1], [0], [0], [1], [0, 0, 1, 1], [], []>} : vector<8x32xf32>, vector<32x128xf32>, vector<8x128xf32> -> vector<8x128xf32>
      %cst_64 = arith.constant dense<0.000000e+00> : vector<8x128xf32>
      %283 = tpu.matmul %233, %26, %cst_64 {dimension_numbers = #tpu.dot_dimension_numbers<[1], [0], [0], [1], [0, 0, 1, 1], [], []>} : vector<8x32xf32>, vector<32x128xf32>, vector<8x128xf32> -> vector<8x128xf32>
      %284 = arith.addf %282, %283 : vector<8x128xf32>
      %285 = vector.broadcast %27 : vector<1x128xf32> to vector<8x128xf32>
      %286 = arith.addf %284, %285 : vector<8x128xf32>
      %287 = vector.extract_strided_slice %286 {offsets = [0, 0], sizes = [8, 96], strides = [1, 1]} : vector<8x128xf32> to vector<8x96xf32>
      %288 = arith.negf %287 : vector<8x96xf32>
      %289 = math.exp %288 : vector<8x96xf32>
      %cst_65 = arith.constant 1.000000e+00 : f32
      %290 = vector.broadcast %cst_65 : f32 to vector<8x96xf32>
      %291 = arith.addf %290, %289 : vector<8x96xf32>
      %292 = arith.divf %290, %291 : vector<8x96xf32>
      %293 = vector.extract_strided_slice %286 {offsets = [0, 96], sizes = [8, 32], strides = [1, 1]} : vector<8x128xf32> to vector<8x32xf32>
      %294 = math.tanh %293 : vector<8x32xf32>
      %295 = vector.extract_strided_slice %292 {offsets = [0, 0], sizes = [8, 32], strides = [1, 1]} : vector<8x96xf32> to vector<8x32xf32>
      %296 = vector.extract_strided_slice %292 {offsets = [0, 32], sizes = [8, 32], strides = [1, 1]} : vector<8x96xf32> to vector<8x32xf32>
      %297 = vector.extract_strided_slice %292 {offsets = [0, 64], sizes = [8, 32], strides = [1, 1]} : vector<8x96xf32> to vector<8x32xf32>
      %298 = arith.mulf %296, %236 : vector<8x32xf32>
      %299 = arith.mulf %295, %294 : vector<8x32xf32>
      %300 = arith.addf %298, %299 : vector<8x32xf32>
      %301 = math.tanh %300 : vector<8x32xf32>
      %302 = arith.mulf %297, %301 : vector<8x32xf32>
      %303 = vector.shape_cast %256 : vector<8x1xi1> to vector<8x1xi1>
      %304 = vector.broadcast %303 : vector<8x1xi1> to vector<8x32xi1>
      %305 = arith.select %304, %302, %233 : vector<8x32xi1>, vector<8x32xf32>
      %306 = vector.shape_cast %256 : vector<8x1xi1> to vector<8x1xi1>
      %307 = vector.broadcast %306 : vector<8x1xi1> to vector<8x32xi1>
      %308 = arith.select %307, %300, %236 : vector<8x32xi1>, vector<8x32xf32>
      %309 = vector.broadcast %28 : vector<1x32xf32> to vector<8x32xf32>
      %310 = arith.mulf %305, %309 : vector<8x32xf32>
      %cst_66 = arith.constant dense<0.000000e+00> : vector<8xf32>
      %311 = vector.multi_reduction <add>, %310, %cst_66 [1] : vector<8x32xf32> to vector<8xf32>
      %312 = vector.shape_cast %311 : vector<8xf32> to vector<8x1xf32>
      %313 = vector.broadcast %29 : vector<1x1xf32> to vector<8x1xf32>
      %314 = arith.addf %312, %313 : vector<8x1xf32>
      %315 = arith.negf %314 : vector<8x1xf32>
      %316 = math.exp %315 : vector<8x1xf32>
      %cst_67 = arith.constant 1.000000e+00 : f32
      %317 = vector.broadcast %cst_67 : f32 to vector<8x1xf32>
      %318 = arith.addf %317, %316 : vector<8x1xf32>
      %319 = arith.divf %317, %318 : vector<8x1xf32>
      %320 = vector.broadcast %319 : vector<8x1xf32> to vector<8x32xf32>
      %321 = arith.mulf %305, %320 : vector<8x32xf32>
      %cst_68 = arith.constant 0.000000e+00 : f32
      %322 = vector.shape_cast %256 : vector<8x1xi1> to vector<8x1xi1>
      %323 = vector.broadcast %322 : vector<8x1xi1> to vector<8x32xi1>
      %324 = vector.broadcast %cst_68 : f32 to vector<8x32xf32>
      %325 = arith.select %323, %321, %324 : vector<8x32xi1>, vector<8x32xf32>
      %326 = vector.shape_cast %109 : vector<8x32xf32> to vector<1x8x32xf32>
      %327 = vector.shape_cast %181 : vector<8x32xf32> to vector<1x8x32xf32>
      %328 = vector.shape_cast %253 : vector<8x32xf32> to vector<1x8x32xf32>
      %329 = vector.shape_cast %325 : vector<8x32xf32> to vector<1x8x32xf32>
      %330 = tpu.concatenate %326, %327, %328, %329 in 0 : vector<1x8x32xf32>, vector<1x8x32xf32>, vector<1x8x32xf32>, vector<1x8x32xf32> -> vector<4x8x32xf32>
      %c0_69 = arith.constant 0 : index
      %c0_70 = arith.constant 0 : index
      %c0_71 = arith.constant 0 : index
      %331 = vector.load %arg13[%c0_69, %c0_70, %c0_71] : memref<4x8x32xf32, #tpu.memory_space<vmem>>, vector<4x8x32xf32>
      tpu.vector_store %arg13[%c0_69, %c0_70, %c0_71], %330 {strides = array<i32>} : memref<4x8x32xf32, #tpu.memory_space<vmem>>, vector<4x8x32xf32>,
      %c0_72 = arith.constant 0 : index
      %c0_73 = arith.constant 0 : index
      %c0_74 = arith.constant 0 : index
      %332 = vector.load %arg16[%c0_72, %c0_73, %c0_74] : memref<2x8x32xf32, #tpu.memory_space<vmem>>, vector<1x8x32xf32>
      %333 = vector.shape_cast %332 : vector<1x8x32xf32> to vector<8x32xf32>
      %334 = vector.shape_cast %278 : vector<8x32xf32> to vector<1x8x32xf32>
      tpu.vector_store %arg16[%c0_72, %c0_73, %c0_74], %334 {strides = array<i32>} : memref<2x8x32xf32, #tpu.memory_space<vmem>>, vector<1x8x32xf32>,
      %c0_75 = arith.constant 0 : index
      %c0_76 = arith.constant 0 : index
      %c0_77 = arith.constant 0 : index
      %335 = vector.load %arg17[%c0_75, %c0_76, %c0_77] : memref<2x8x32xf32, #tpu.memory_space<vmem>>, vector<1x8x32xf32>
      %336 = vector.shape_cast %335 : vector<1x8x32xf32> to vector<8x32xf32>
      %337 = vector.shape_cast %281 : vector<8x32xf32> to vector<1x8x32xf32>
      tpu.vector_store %arg17[%c0_75, %c0_76, %c0_77], %337 {strides = array<i32>} : memref<2x8x32xf32, #tpu.memory_space<vmem>>, vector<1x8x32xf32>,
      %c1_78 = arith.constant 1 : index
      %c0_79 = arith.constant 0 : index
      %c0_80 = arith.constant 0 : index
      %338 = vector.load %arg16[%c1_78, %c0_79, %c0_80] : memref<2x8x32xf32, #tpu.memory_space<vmem>>, vector<1x8x32xf32>
      %339 = vector.shape_cast %338 : vector<1x8x32xf32> to vector<8x32xf32>
      %340 = vector.shape_cast %305 : vector<8x32xf32> to vector<1x8x32xf32>
      tpu.vector_store %arg16[%c1_78, %c0_79, %c0_80], %340 {strides = array<i32>} : memref<2x8x32xf32, #tpu.memory_space<vmem>>, vector<1x8x32xf32>,
      %c1_81 = arith.constant 1 : index
      %c0_82 = arith.constant 0 : index
      %c0_83 = arith.constant 0 : index
      %341 = vector.load %arg17[%c1_81, %c0_82, %c0_83] : memref<2x8x32xf32, #tpu.memory_space<vmem>>, vector<1x8x32xf32>
      %342 = vector.shape_cast %341 : vector<1x8x32xf32> to vector<8x32xf32>
      %343 = vector.shape_cast %308 : vector<8x32xf32> to vector<1x8x32xf32>
      tpu.vector_store %arg17[%c1_81, %c0_82, %c0_83], %343 {strides = array<i32>} : memref<2x8x32xf32, #tpu.memory_space<vmem>>, vector<1x8x32xf32>,
    } else {
    }
    %c1_i32 = arith.constant 1 : i32
    %13 = arith.cmpi eq, %arg1, %c1_i32 : i32
    %14 = arith.extui %13 : i1 to i32
    %c0_i32_3 = arith.constant 0 : i32
    %15 = arith.cmpi ne, %14, %c0_i32_3 : i32
    scf.if %15 {
      %c0 = arith.constant 0 : index
      %c0_4 = arith.constant 0 : index
      %c0_5 = arith.constant 0 : index
      %16 = vector.load %arg16[%c0, %c0_4, %c0_5] : memref<2x8x32xf32, #tpu.memory_space<vmem>>, vector<2x8x32xf32>
      %c0_6 = arith.constant 0 : index
      %c0_7 = arith.constant 0 : index
      %c0_8 = arith.constant 0 : index
      %17 = vector.load %arg14[%c0_6, %c0_7, %c0_8] : memref<2x8x32xf32, #tpu.memory_space<vmem>>, vector<2x8x32xf32>
      tpu.vector_store %arg14[%c0_6, %c0_7, %c0_8], %16 {strides = array<i32>} : memref<2x8x32xf32, #tpu.memory_space<vmem>>, vector<2x8x32xf32>,
      %c0_9 = arith.constant 0 : index
      %c0_10 = arith.constant 0 : index
      %c0_11 = arith.constant 0 : index
      %18 = vector.load %arg17[%c0_9, %c0_10, %c0_11] : memref<2x8x32xf32, #tpu.memory_space<vmem>>, vector<2x8x32xf32>
      %c0_12 = arith.constant 0 : index
      %c0_13 = arith.constant 0 : index
      %c0_14 = arith.constant 0 : index
      %19 = vector.load %arg15[%c0_12, %c0_13, %c0_14] : memref<2x8x32xf32, #tpu.memory_space<vmem>>, vector<2x8x32xf32>
      tpu.vector_store %arg15[%c0_12, %c0_13, %c0_14], %18 {strides = array<i32>} : memref<2x8x32xf32, #tpu.memory_space<vmem>>, vector<2x8x32xf32>,
    } else {
    }
    return
  }
  func.func @transform_0(%arg0: i32, %arg1: i32, %arg2: memref<8xi32, #tpu.memory_space<smem>>) -> (i32, i32, i32) {
    %c0_i32 = arith.constant 0 : i32
    %c0_i32_0 = arith.constant 0 : i32
    return %arg1, %arg0, %c0_i32 : i32, i32, i32
  }
  func.func @transform_1(%arg0: i32, %arg1: i32, %arg2: memref<8xi32, #tpu.memory_space<smem>>) -> (i32, i32) {
    %c0_i32 = arith.constant 0 : i32
    %c0_i32_0 = arith.constant 0 : i32
    return %arg0, %c0_i32 : i32, i32
  }
  func.func @transform_2(%arg0: i32, %arg1: i32, %arg2: memref<8xi32, #tpu.memory_space<smem>>) -> (i32, i32) {
    %c0_i32 = arith.constant 0 : i32
    %c0_i32_0 = arith.constant 0 : i32
    %c0_i32_1 = arith.constant 0 : i32
    return %c0_i32, %c0_i32_0 : i32, i32
  }
  func.func @transform_3(%arg0: i32, %arg1: i32, %arg2: memref<8xi32, #tpu.memory_space<smem>>) -> (i32, i32) {
    %c0_i32 = arith.constant 0 : i32
    %c0_i32_0 = arith.constant 0 : i32
    %c0_i32_1 = arith.constant 0 : i32
    return %c0_i32, %c0_i32_0 : i32, i32
  }
  func.func @transform_4(%arg0: i32, %arg1: i32, %arg2: memref<8xi32, #tpu.memory_space<smem>>) -> (i32, i32) {
    %c0_i32 = arith.constant 0 : i32
    %c0_i32_0 = arith.constant 0 : i32
    %c0_i32_1 = arith.constant 0 : i32
    return %c0_i32, %c0_i32_0 : i32, i32
  }
  func.func @transform_5(%arg0: i32, %arg1: i32, %arg2: memref<8xi32, #tpu.memory_space<smem>>) -> (i32, i32) {
    %c0_i32 = arith.constant 0 : i32
    %c0_i32_0 = arith.constant 0 : i32
    %c0_i32_1 = arith.constant 0 : i32
    return %c0_i32, %c0_i32_0 : i32, i32
  }
  func.func @transform_6(%arg0: i32, %arg1: i32, %arg2: memref<8xi32, #tpu.memory_space<smem>>) -> (i32, i32) {
    %c0_i32 = arith.constant 0 : i32
    %c0_i32_0 = arith.constant 0 : i32
    %c0_i32_1 = arith.constant 0 : i32
    return %c0_i32, %c0_i32_0 : i32, i32
  }
  func.func @transform_7(%arg0: i32, %arg1: i32, %arg2: memref<8xi32, #tpu.memory_space<smem>>) -> (i32, i32) {
    %c0_i32 = arith.constant 0 : i32
    %c0_i32_0 = arith.constant 0 : i32
    %c0_i32_1 = arith.constant 0 : i32
    return %c0_i32, %c0_i32_0 : i32, i32
  }
  func.func @transform_8(%arg0: i32, %arg1: i32, %arg2: memref<8xi32, #tpu.memory_space<smem>>) -> (i32, i32) {
    %c0_i32 = arith.constant 0 : i32
    %c0_i32_0 = arith.constant 0 : i32
    %c0_i32_1 = arith.constant 0 : i32
    return %c0_i32, %c0_i32_0 : i32, i32
  }
  func.func @transform_9(%arg0: i32, %arg1: i32, %arg2: memref<8xi32, #tpu.memory_space<smem>>) -> (i32, i32) {
    %c0_i32 = arith.constant 0 : i32
    %c0_i32_0 = arith.constant 0 : i32
    %c0_i32_1 = arith.constant 0 : i32
    return %c0_i32, %c0_i32_0 : i32, i32
  }
  func.func @transform_10(%arg0: i32, %arg1: i32, %arg2: memref<8xi32, #tpu.memory_space<smem>>) -> (i32, i32, i32) {
    %c0_i32 = arith.constant 0 : i32
    %c0_i32_0 = arith.constant 0 : i32
    return %arg1, %arg0, %c0_i32 : i32, i32, i32
  }
  func.func @transform_11(%arg0: i32, %arg1: i32, %arg2: memref<8xi32, #tpu.memory_space<smem>>) -> (i32, i32, i32) {
    %c0_i32 = arith.constant 0 : i32
    %c0_i32_0 = arith.constant 0 : i32
    %c0_i32_1 = arith.constant 0 : i32
    return %c0_i32, %arg0, %c0_i32_0 : i32, i32, i32
  }
  func.func @transform_12(%arg0: i32, %arg1: i32, %arg2: memref<8xi32, #tpu.memory_space<smem>>) -> (i32, i32, i32) {
    %c0_i32 = arith.constant 0 : i32
    %c0_i32_0 = arith.constant 0 : i32
    %c0_i32_1 = arith.constant 0 : i32
    return %c0_i32, %arg0, %c0_i32_0 : i32, i32, i32
  }
}

</mosaic_0001>

<bundles_post_ra>
// kernel: tpu_custom_call.1
= control target key start
LH: loop header
LB: loop body
LE: loop exit
PB: predicated region body
PF: predicated region fallthrough
CT: control target
= control target key end

     0   :  { %s3851_s0 = inlined_call_operand.vmem [shape: s32[8], index: 0, kind: input, shape index: {}]   ;;  %s3852_s1 = inlined_call_operand.hbm [shape: f32[8,8,32], index: 1, kind: input, shape index: {}]   ;;  %s3853_s2 = inlined_call_operand.vmem [shape: s32[8,1], index: 2, kind: input, shape index: {}]   ;;  %s3854_s3 = inlined_call_operand.hbm [shape: f32[32,128], index: 3, kind: input, shape index: {}]   ;;  %s3855_s4 = inlined_call_operand.hbm [shape: f32[32,128], index: 4, kind: input, shape index: {}]   ;;  %s3856_s5 = inlined_call_operand.vmem [shape: f32[1,128], index: 5, kind: input, shape index: {}]   ;;  %s3857_s6 = inlined_call_operand.vmem [shape: f32[32,128], index: 6, kind: input, shape index: {}]   ;;  %s3858_s7 = inlined_call_operand.hbm [shape: f32[32,128], index: 7, kind: input, shape index: {}]   ;;  %s3859_s8 = inlined_call_operand.vmem [shape: f32[1,128], index: 8, kind: input, shape index: {}]   ;;  %s3860_s9 = inlined_call_operand.vmem [shape: f32[1,32], index: 9, kind: input, shape index: {}]   ;;  %s3861_s11 = inlined_call_operand.hbm [shape: f32[8,8,32], index: 11, kind: output, shape index: {0}]   ;;  %s3862_s12 = inlined_call_operand.hbm [shape: f32[2,8,32], index: 12, kind: output, shape index: {1}]   ;;  %s3863_s13 = inlined_call_operand.hbm [shape: f32[2,8,32], index: 13, kind: output, shape index: {2}]   ;;  %s3864_s10 = inlined_call_operand.<no memory space> [shape: f32[1,1], index: 10, kind: input, shape index: {}]  }
   0x1   :  { %3876 = sst [smem:[#allocation27_spill]] %s3852_s1  ;;  %s19_s27 = sshll.u32 %s3851_s0, 4  ;;  %v23_v0 = vstv %s3864_s10  ;;  %s20_s27 = int_to_ptr.vmem [resolvable:$true] %s19_s27 }
   0x2   :  { %3877 = sst [smem:[#allocation28_spill]] %s3857_s6  ;;  %24 = vst [vmem:[#allocation6] sm:$0x1] %v23_v0  ;;  %s2748_s30 = scalar_lea.vmem %s20_s27, 16 }
   0x3   :  { %3878 = sst [smem:[#allocation29_spill]] %s3859_s8  ;;  %p2749_p0 = scmp.ne.s32.totalorder %s20_s27, %s2748_s30 }
   0x4   :  { %3879 = sst [smem:[#allocation30_spill]] %s3860_s9  ;;  %p2753_p1 = scmp.lt.s32.totalorder %s20_s27, %s20_s27 }
   0x5   :  { %3880 = sst [smem:[#allocation31_spill]] %s3861_s11  ;;  %p2754_p2 = scmp.lt.s32.totalorder %s2748_s30, %s2748_s30 }
   0x6   :  { %3881 = sst [smem:[#allocation32_spill]] %s3862_s12 }
   0x7   :  { %3882 = sst [smem:[#allocation33_spill]] %s3863_s13  ;;  %p2755_p3 = por %p2754_p2, %p2753_p1 }
   0x9   :  { %p2756_p4 = pnand %p2755_p3, %p2749_p0 }
   0xb   :  { %2759 = shalt.err (!%p2756_p4)  }
   0xc   :  { %s3024_s14 = smov [#allocation5]  }
   0xd   :  { %22 = dma.vmem_to_smem %s20_s27, 16, %s3024_s14, [#allocation4] }
   0xe   :  { %2978 = dma.done.wait [#allocation4], 16 }
   0xf   :  { %2979 = vsyncadd [#allocation4], 4294967280 }
  0x10   :  { %26 = sfence }
  0x11   :  { %27 = vsyncpa [#allocation8], 0 }
  0x12   :  { %29 = vsyncpa [#allocation8 + $0x1], 0 }
  0x13   :  { %30 = vsyncpa [#allocation11], 0 }
  0x14   :  { %31 = vsyncpa [#allocation14], 0 }
  0x15   :  { %32 = vsyncpa [#allocation9], 0 }
  0x16   :  { %34 = vsyncpa [#allocation9 + $0x1], 0 }
  0x17   :  { %35 = vsyncpa [#allocation17], 0  ;;  %s3121_s0 = smov 0   ;;  %s3123_s10 = smov 0  }
  0x18   :  { %s3125_s15 = smov 0   ;;  %s3127_s16 = smov 0  }
  0x19   :  { %s3129_s17 = smov 0   ;;  %s3131_s18 = smov 0  }
  0x1a LB: > { %3883 = sst [smem:[#allocation25_spill]] %s3002_s0  ;;  %s2186_s19 = sadd.s32 4294967295, %s3022_s18   ;;  %s3022_s18 = sphi %s3131_s18, %s41_s18   ;;  %s3018_s17 = sphi %s3129_s17, %s3914_s17   ;;  %s3014_s16 = sphi %s3127_s16, %s3913_s16   ;;  %s3010_s15 = sphi %s3125_s15, %s3912_s15   ;;  %s3006_s10 = sphi %s3123_s10, %s3911_s10   ;;  %s3002_s0 = sphi %s3121_s0, %s3910_s0  }
  0x1b   : > { %s2187_s20 = sadd.s32 4294967294, %s3022_s18   ;;  %p75_p5 = scmp.ne.s32.totalorder %s3006_s10, %s3002_s0 }
  0x1c   : > { %p3155_p6 = scmp.eq.s32.totalorder %s2186_s19, 0  ;;  %p3159_p7 = scmp.eq.s32.totalorder %s2186_s19, 1 }
  0x1d   : > { %p301_p8 = scmp.eq.s32.totalorder %s2187_s20, 1  ;;  %p2188_p10 = scmp.ge.s32.totalorder %s3022_s18, 1 }
  0x1e   : > { %s3884_s21 = scalar_select %p3155_p6, 1, 0 }
  0x1f   : > { %s3885_s22 = scalar_select %p3159_p7, 1, 0 }
  0x20   : > { %p3165_p9 = por %p3155_p6, %p75_p5  ;;  %p3170_p11 = por %p301_p8, %p75_p5 }
  0x21   : > { %p360_p12 = scmp.lt.s32.totalorder %s3022_s18, 3  ;;  %s3025_s26 = smov [#allocation10]  }
  0x22   : > { %s3886_s23 = scalar_select %p3165_p9, 1, 0 }
  0x23   : > { %s3887_s24 = scalar_select %p3170_p11, 1, 0 }
  0x24   : > { %p3175_p13 = pnand %p2188_p10, %p360_p12  ;;  %s379_s27 = sshll.u32 %s3025_s26, 4  ;;  %s3179_s27 = int_to_ptr.vmem [resolvable:$true] %s379_s27 }
  0x25   : > { %3888 = sst [smem:[#allocation26_spill]] %s3887_s24  ;;  %s3026_s29 = smov [#allocation12]  }
  0x26   : > { %s3889_s25 = scalar_select %p3175_p13, 1, 0 }
  0x27   : > { %p2569_p0 = pneg %p3175_p13  ;;  %s392_s30 = sshll.u32 %s3026_s29, 4  ;;  %s3190_s30 = int_to_ptr.vmem [resolvable:$true] %s392_s30 }
  0x28   : > { %s3027_s14 = smov [#allocation13]   ;;  %s2760_s24 = scalar_lea.hbm %s3854_s3, 512 }
  0x29   : > { %p3186_p2 = pnand %p2569_p0, %p3155_p6  ;;  %s3192_s19 = sshll.u32 %s3027_s14, 4  ;;  %s412_s19 = int_to_ptr.vmem [resolvable:$true] %s3192_s19 }
  0x2a   : > { %p2761_p3 = scmp.ne.s32.totalorder %s3854_s3, %s2760_s24  ;;  %p2767_p10 = scmp.lt.u32.totalorder %s2760_s24, %s3854_s3 }
  0x2b   : > { %p3202_p4 = pneg %p3186_p2 }
  0x2d   : > { %p2763_p5 = pnand %p3202_p4, %p2761_p3 }
  0x2f   : > { %p2764_p8 = pneg %p2763_p5 }
  0x31   : > { %p2769_p12 = pnand %p2767_p10, %p2764_p8 }
  0x33   : > { %2772 = shalt.err (!%p2769_p12)
}
  0x34   : > { %s2773_s13 = scalar_lea.vmem %s3179_s27, 512  ;;  %p2781_p6 = scmp.lt.s32.totalorder %s3179_s27, %s3179_s27 }
  0x35   : > { %p2774_p0 = scmp.ne.s32.totalorder %s3179_s27, %s2773_s13  ;;  %p2782_p9 = scmp.lt.s32.totalorder %s2773_s13, %s2773_s13 }
  0x37   : > { %p2776_p1 = pnand %p2774_p0, %p3202_p4  ;;  %p2783_p3 = por %p2782_p9, %p2781_p6 }
  0x39   : > { %p2777_p11 = pneg %p2776_p1 }
  0x3b   : > { %p2784_p5 = pnand %p2783_p3, %p2777_p11 }
  0x3d   : > { %2787 = shalt.err (!%p2784_p5)
}
  0x3e   : > { %s3028_s0 = smov 128   ;;  %s3029_s24 = smov 8  }
  0x3f   : > { %2572 = dma.hbm_to_vmem [thread:$0]  (!%p3186_p2), %s3854_s3, 512, %s3179_s27, [#allocation11], %s3028_s0, %s3028_s0, %s3029_s24  }
  0x40   : > { %s2788_s13 = scalar_lea.hbm %s3855_s4, 512 }
  0x41   : > { %p2789_p6 = scmp.ne.s32.totalorder %s3855_s4, %s2788_s13  ;;  %p2795_p1 = scmp.lt.u32.totalorder %s2788_s13, %s3855_s4 }
  0x43   : > { %p2791_p9 = pnand %p2789_p6, %p3202_p4 }
  0x45   : > { %p2792_p11 = pneg %p2791_p9 }
  0x47   : > { %p2797_p8 = pnand %p2795_p1, %p2792_p11 }
  0x49   : > { %2800 = shalt.err (!%p2797_p8)
}
  0x4a   : > { %s2801_s27 = scalar_lea.vmem %s3190_s30, 512  ;;  %p2809_p3 = scmp.lt.s32.totalorder %s3190_s30, %s3190_s30 }
  0x4b   : > { %p2802_p10 = scmp.ne.s32.totalorder %s3190_s30, %s2801_s27  ;;  %p2810_p5 = scmp.lt.s32.totalorder %s2801_s27, %s2801_s27 }
  0x4d   : > { %p2804_p12 = pnand %p2802_p10, %p3202_p4  ;;  %p2811_p6 = por %p2810_p5, %p2809_p3 }
  0x4f   : > { %p2805_p0 = pneg %p2804_p12 }
  0x51   : > { %p2812_p9 = pnand %p2811_p6, %p2805_p0 }
  0x53   : > { %2815 = shalt.err (!%p2812_p9)
}
  0x54   : > { %2575 = dma.hbm_to_vmem [thread:$0]  (!%p3186_p2), %s3855_s4, 512, %s3190_s30, [#allocation11], %s3028_s0, %s3028_s0, %s3029_s24  }
  0x55   : > { %s2816_s20 = scalar_lea.hbm %s3858_s7, 512 }
  0x56   : > { %p2817_p11 = scmp.ne.s32.totalorder %s3858_s7, %s2816_s20  ;;  %p2823_p10 = scmp.lt.u32.totalorder %s2816_s20, %s3858_s7 }
  0x58   : > { %p2819_p1 = pnand %p2817_p11, %p3202_p4 }
  0x5a   : > { %p2820_p8 = pneg %p2819_p1 }
  0x5c   : > { %p2825_p12 = pnand %p2823_p10, %p2820_p8 }
  0x5e   : > { %2828 = shalt.err (!%p2825_p12)
}
  0x5f   : > { %s2829_s27 = scalar_lea.vmem %s412_s19, 512  ;;  %p2837_p6 = scmp.lt.s32.totalorder %s412_s19, %s412_s19 }
  0x60   : > { %p2830_p0 = scmp.ne.s32.totalorder %s412_s19, %s2829_s27  ;;  %p2838_p9 = scmp.lt.s32.totalorder %s2829_s27, %s2829_s27 }
  0x62   : > { %p2832_p3 = pnand %p2830_p0, %p3202_p4  ;;  %p2839_p13 = por %p2838_p9, %p2837_p6 }
  0x64   : > { %p2833_p5 = pneg %p2832_p3 }
  0x66   : > { %p2840_p7 = pnand %p2839_p13, %p2833_p5 }
  0x68   : > { %2843 = shalt.err (!%p2840_p7)
}
  0x69   : > { %2578 = dma.hbm_to_vmem [thread:$0]  (!%p3186_p2), %s3858_s7, 512, %s412_s19, [#allocation14], %s3028_s0, %s3028_s0, %s3029_s24  }
  0x6a   : > { %s62_s11 = sadd.s32 1, %s3010_s15  ;;  %s50_s28 = sadd.s32 1, %s3018_s17 }
  0x6b   : > { %p69_p7 = scmp.ne.s32.totalorder %s3010_s15, %s3006_s10  ;;  %p51_p13 = scmp.ge.s32.totalorder %s50_s28, 2 }
  0x6c   : > { %p70_p4 = scmp.eq.s32.totalorder %s3022_s18, 0  ;;  %p3892_p11 = scmp.ne.s32.totalorder %s3885_s22, 0 }
  0x6d   : > { %p2590_p8 = scmp.lt.s32.totalorder %s3022_s18, 2  ;;  %s3916_s28 = smov (%p51_p13, %s50_s28), 0 }
  0x6e   : > { %p3281_p1 = por %p3892_p11, %p69_p7  ;;  %p71_p10 = por %p70_p4, %p69_p7 }
  0x6f   : > { %s434_s9 = sand.u32 1, %s3010_s15   ;;  %s57_s12 = ssub.s32 %s3018_s17, %s3916_s28 }
  0x70   : > { %p60_p12 = scmp.eq.s32.totalorder %s57_s12, 0  ;;  %s2194_s19 = sshll.u32 %s434_s9, 5 }
  0x71   : > { %s2249_s20 = sshll.u32 %s3018_s17, 9  ;;  %s3894_s1 = sld [smem:[#allocation27_spill]] }
  0x72   : > { %s3293_s26 = scalar_select %p60_p12, %s3010_s15, %s62_s11  }
  0x73   : > { %s438_s27 = scalar_lea.vmem [#allocation7], %s2194_s19  ;;  %p3304_p2 = pnand %p2590_p8, %p71_p10 }
  0x74   : > { %s446_s30 = sshll.u32 %s438_s27, 4  ;;  %s3308_s11 = scalar_lea.sflag [#allocation8], %s434_s9  ;;  %s3300_s30 = int_to_ptr.vmem [resolvable:$true] %s446_s30 }
  0x75   : > { %p2846_p3 = pneg %p3304_p2 }
  0x77   : > { %s3298_s13 = scalar_lea.hbm %s3894_s1, %s2249_s20  ;;  %s2849_s29 = scalar_lea.hbm %s3894_s1, 1024 }
  0x78   : > { %s2844_s12 = scalar_lea.hbm %s3298_s13, 512  ;;  %p2850_p9 = scmp.lt.u32.totalorder %s3298_s13, %s3894_s1 }
  0x79   : > { %p2845_p0 = scmp.ne.s32.totalorder %s3298_s13, %s2844_s12  ;;  %p2851_p7 = scmp.lt.u32.totalorder %s2849_s29, %s2844_s12 }
  0x7a   : > { %p2853_p4 = scmp.lt.u32.totalorder %s2844_s12, %s3298_s13 }
  0x7b   : > { %p2847_p5 = pnand %p2846_p3, %p2845_p0  ;;  %p2852_p13 = por %p2851_p7, %p2850_p9 }
  0x7d   : > { %p2848_p6 = pneg %p2847_p5  ;;  %p2854_p11 = por %p2853_p4, %p2852_p13 }
  0x7f   : > { %p2855_p8 = pnand %p2854_p11, %p2848_p6 }
  0x81   : > { %2858 = shalt.err (!%p2855_p8)
}
  0x82   : > { %s2859_s9 = scalar_lea.vmem %s3300_s30, 512  ;;  %s3030_s19 = smov [#allocation7]  }
  0x83   : > { %p2860_p10 = scmp.ne.s32.totalorder %s3300_s30, %s2859_s9  ;;  %s2864_s20 = sshll.u32 %s3030_s19, 4  ;;  %s2865_s20 = int_to_ptr.vmem [resolvable:$false] %s2864_s20 }
  0x84   : > { %s2866_s14 = scalar_lea.vmem %s2865_s20, 1024  ;;  %p2867_p5 = scmp.lt.s32.totalorder %s3300_s30, %s2865_s20 }
  0x85   : > { %p2862_p12 = pnand %p2860_p10, %p2846_p3  ;;  %p2868_p9 = scmp.lt.s32.totalorder %s2866_s14, %s2859_s9 }
  0x87   : > { %p2863_p0 = pneg %p2862_p12  ;;  %p2869_p7 = por %p2868_p9, %p2867_p5 }
  0x89   : > { %p2870_p13 = pnand %p2869_p7, %p2863_p0 }
  0x8b   : > { %2873 = shalt.err (!%p2870_p13)
}
  0x8c   : > { %2582 = dma.hbm_to_vmem [thread:$0]  (!%p3304_p2), %s3298_s13, 512, %s3300_s30, %s3308_s11, %s3028_s0, %s3028_s0, %s3029_s24  }
  0x8d   : > { %p3896_p3 = scmp.ne.s32.totalorder %s3889_s25, 0 }
  0x8e   : > { %s3342_s12 = sand.u32 (!%p3896_p3), 1, %s3006_s10   ;;  %p3897_p6 = scmp.ne.s32.totalorder (!%p3896_p3), %s3886_s23, 0 }
  0x8f   : > { %458 = sbr.rel (%p3896_p3) target bundleno = 4246 (0x1096), region = 60  ;;  %s2198_s29 = sshll.u32 (!%p3896_p3), %s3342_s12, 5 }
  0x90   : > { %s461_s27 = scalar_lea.sflag (!%p3896_p3), [#allocation8], %s3342_s12  ;;  %s3346_s9 = scalar_lea.vmem (!%p3896_p3), [#allocation7], %s2198_s29 }
  0x96   : > { %2981 = dma.done.wait (%p3897_p6), %s461_s27, 512  }
  0x97   : > { %2983 = vsyncadd (%p3897_p6), %s461_s27, 4294966784  ;;  %p3898_p2 = scmp.ne.s32.totalorder %s3884_s21, 0 }
  0x99   : > { %2985 = dma.done.wait (%p3898_p2), [#allocation11], 1024  }
  0x9a   : > { %2987 = vsyncadd (%p3898_p2), [#allocation11], 4294966272 }
  0x9b   : > { %2989 = dma.done.wait (%p3898_p2), [#allocation14], 512  }
  0x9c   : > { %2991 = vsyncadd (%p3898_p2), [#allocation14], 4294966784  ;;  %s3360_s25 = scalar_lea.vmem [#allocation15], %s2198_s29  ;;  %p2203_p4 = scmp.ne.s32.totalorder %s3014_s16, 0 }
  0x9d   : > { %vm531_vm0 = vcmask (!%p2203_p4), 261120   ;;  %v3031_v1 = vmov (!%p2203_p4), 0.0  }
  0x9e   : > { %530 = sbr.rel (%p2203_p4) target bundleno = 165 (0xa5), region = 80  ;;  %532 = vst.msk [vmem:[#allocation2] sm:$0xff] (!%p2203_p4), %vm531_vm0, %v3031_v1  ;;  %533 = vst.msk [vmem:[#allocation2 + $0x8] sm:$0xff] (!%p2203_p4), %vm531_vm0, %v3031_v1 }
  0x9f   : > { %534 = vst.msk [vmem:[#allocation3] sm:$0xff] (!%p2203_p4), %vm531_vm0, %v3031_v1  ;;  %535 = vst.msk [vmem:[#allocation3 + $0x8] sm:$0xff] (!%p2203_p4), %vm531_vm0, %v3031_v1 }
  0xa5 PF: > { %s3364_s23 = sshll.u32 %s3014_s16, 2  ;;  %s538_s0 = sld [smem:[#allocation5]] }
  0xab   : > { %p2205_p11 = scmp.lt.s32.totalorder %s3364_s23, %s538_s0 }
  0xac   : > { %vm543_vm1 = vcmask (!%p2205_p11), 261120   ;;  %v3032_v2 = vmov (!%p2205_p11), 0.0  }
  0xad   : > { %542 = sbr.rel (%p2205_p11) target bundleno = 180 (0xb4), region = 84  ;;  %544 = vst.msk [vmem:[%s3360_s25] sm:$0xff] (!%p2205_p11), %vm543_vm1, %v3032_v2  ;;  %545 = vst.msk [vmem:[%s3360_s25 + $0x8] sm:$0xff] (!%p2205_p11), %vm543_vm1, %v3032_v2 }
  0xae   : > { %546 = vst.msk [vmem:[%s3360_s25 + $0x10] sm:$0xff] (!%p2205_p11), %vm543_vm1, %v3032_v2  ;;  %547 = vst.msk [vmem:[%s3360_s25 + $0x18] sm:$0xff] (!%p2205_p11), %vm543_vm1, %v3032_v2 }
  0xb4 PF: > { %p2206_p8 = scmp.ge.s32.totalorder %s3364_s23, %s538_s0 }
  0xb5   : > { %v557_v3 = vld [vmem:[#allocation10] sm:$0xff] (!%p2206_p8)  ;;  %v558_v4 = vld [vmem:[#allocation10 + $0x8] sm:$0xff] (!%p2206_p8)  ;;  %vm568_vm2 = vcmask (!%p2206_p8), 261120   ;;  %v3033_v7 = vmov (!%p2206_p8), 0.0|0.0   ;;  %v559_v9 = vld [vmem:[#allocation10 + $0x10] sm:$0xff] (!%p2206_p8)  ;;  %vm3034_vm3 = vmmov (!%p2206_p8), 0   ;;  %v687_v34 = vstv (!%p2206_p8), %s3364_s23 }
  0xb6   : > { %551 = sbr.rel (%p2206_p8) target bundleno = 4152 (0x1038), region = 88  ;;  %v666_v5 = vld [vmem:[#allocation12] sm:$0xff] (!%p2206_p8)  ;;  %v2465_v6 = vpack.c.bf16 (!%p2206_p8), %v558_v4, %v557_v3  ;;  %2473 = vmatprep.subr.bf16.mxu1 (!%p2206_p8), %v3033_v7  ;;  %v667_v8 = vld [vmem:[#allocation12 + $0x8] sm:$0xff] (!%p2206_p8)  ;;  %v560_v10 = vld [vmem:[#allocation10 + $0x18] sm:$0xff] (!%p2206_p8)  ;;  %v3035_v16 = vmov (!%p2206_p8), 0.0   ;;  %v3036_v27 = vmov (!%p2206_p8), 0  }
  0xb7   : > { %v3373_v11 = vpack.c.bf16 (!%p2206_p8), %v667_v8, %v666_v5  ;;  %v2469_v12 = vpack.c.bf16 (!%p2206_p8), %v560_v10, %v559_v9  ;;  %v553_v13 = vld [vmem:[%s3346_s9] sm:$0xff] (!%p2206_p8)  ;;  %v668_v14 = vld [vmem:[#allocation12 + $0x10] sm:$0xff] (!%p2206_p8)  ;;  %v669_v15 = vld [vmem:[#allocation12 + $0x18] sm:$0xff] (!%p2206_p8)  ;;  %2341 = vmatprep.mubr.msk.f32.mxu1 (!%p2206_p8), %vm3034_vm3, %v3035_v16  ;;  %2666 = vset.pattern.permute.xlu1 (!%p2206_p8), %v3036_v27  ;;  %s3037_s13 = smov (!%p2206_p8), 32   ;;  %s3038_s11 = smov (!%p2206_p8), 64  }
  0xb8   : > { %2466 = vmatprep.subr.bf16.mxu0 (!%p2206_p8), %v2465_v6  ;;  %2327 = vmatprep.mubr.msk.f32.mxu0 (!%p2206_p8), %vm568_vm2, %v553_v13  ;;  %v3380_v17 = vpack.c.bf16 (!%p2206_p8), %v669_v15, %v668_v14  ;;  %v554_v18 = vld [vmem:[%s3346_s9 + $0x8] sm:$0xff] (!%p2206_p8)  ;;  %v681_v19 = vld [vmem:[#allocation2] sm:$0xff] (!%p2206_p8)  ;;  %v555_v45 = vld [vmem:[%s3346_s9 + $0x10] sm:$0xff] (!%p2206_p8)  ;;  %s3899_s14 = sld [smem:[#allocation28_spill]] (!%p2206_p8)  ;;  %s3900_s19 = sld [smem:[#allocation29_spill]] (!%p2206_p8) }
  0xb9   : > { %2468 = vmatpush3.bf16.msra.mxu0 (!%p2206_p8), %v2465_v6  ;;  %2475 = vmatpush3.bf16.msra.mxu1 (!%p2206_p8), %v3373_v11  ;;  %v3394_v20 = vld [vmem:[%s3856_s5] ss:$0 sm:$0xff] (!%p2206_p8)  ;;  %v684_v29 = vld [vmem:[#allocation3] sm:$0xff] (!%p2206_p8)  ;;  %v674_v43 = vld [vmem:[#allocation13] sm:$0xff] (!%p2206_p8)  ;;  %s1025_s20 = sadd.s32 (!%p2206_p8), 1, %s3364_s23  ;;  %s1329_s29 = sadd.s32 (!%p2206_p8), 2, %s3364_s23 }
  0xba   : > { %2470 = vmatprep.subr.bf16.mxu0 (!%p2206_p8), %v2469_v12  ;;  %2476 = vmatprep.subr.bf16.mxu1 (!%p2206_p8), %v3033_v7  ;;  %v3406_v33 = vld [vmem:[%s3853_s2] sm:$0xff] (!%p2206_p8)  ;;  %v675_v44 = vld [vmem:[#allocation13 + $0x8] sm:$0xff] (!%p2206_p8)  ;;  %v676_v48 = vld [vmem:[#allocation13 + $0x10] sm:$0xff] (!%p2206_p8)  ;;  %s1633_s27 = sadd.s32 (!%p2206_p8), 3, %s3364_s23  ;;  %s3901_s0 = sld [smem:[#allocation30_spill]] (!%p2206_p8) }
  0xbb   : > { %2667 = vset.pattern.permute.xlu0 (!%p2206_p8), %v3036_v27  ;;  %vm688_vm4 = vcmp.lt.s32.totalorder (!%p2206_p8), %v687_v34, %v3406_v33  ;;  %v3420_v46 = vpack.c.bf16 (!%p2206_p8), %v675_v44, %v674_v43  ;;  %v556_v47 = vld [vmem:[%s3346_s9 + $0x18] sm:$0xff] (!%p2206_p8)  ;;  %v3450_v57 = vld [vmem:[#allocation2 + $0x8] sm:$0xff] (!%p2206_p8) }
  0xbc   : > { %v791_v38 = vsel (!%p2206_p8), %vm688_vm4, 1, %v3036_v27  ;;  %v677_v49 = vld [vmem:[#allocation13 + $0x18] sm:$0xff] (!%p2206_p8) }
  0xbd   : > { %2472 = vmatpush3.bf16.msra.mxu0 %v2469_v12  ;;  %2478 = vmatpush3.bf16.msra.mxu1 %v3380_v17  ;;  %v3432_v52 = vpack.c.bf16 %v677_v49, %v676_v48 }
  0xbe   : > { %2479 = vmatprep.subr.bf16.mxu0 %v3033_v7  ;;  %2485 = vmatprep.subr.bf16.mxu1 %v3033_v7  ;;  %v670_v50 = vld [vmem:[%s3899_s14] sm:$0xff]  ;;  %v671_v51 = vld [vmem:[%s3899_s14 + $0x8] sm:$0xff]  ;;  %v672_v54 = vld [vmem:[%s3899_s14 + $0x10] sm:$0xff] }
  0xbf   : > { %v3436_v53 = vpack.c.bf16 %v671_v51, %v670_v50  ;;  %v673_v55 = vld [vmem:[%s3899_s14 + $0x18] sm:$0xff]  ;;  %v3496_v6 = vld [vmem:[%s3900_s19] ss:$0 sm:$0xff] }
  0xc0   : > { %2328 = vmatmul.mubr.msk.f32.vlgmr.msra.gmra.mrb[0].mxu0 %vm568_vm2, %v554_v18  ;;  %2342 = vmatmul.mubr.msk.f32.vlgmr.msra.gmra.mrb[0].mxu1 %vm568_vm2, %v681_v19  ;;  %v3446_v56 = vpack.c.bf16 %v673_v55, %v672_v54 }
  0xc1   : > { %2363 = vmatprep.mubr.msk.f32.mxu1 %vm3034_vm3, %v3035_v16  ;;  %2330 = vmatprep.mubr.msk.f32.mxu0 %vm568_vm2, %v555_v45 }
  0xc2   : > { %2481 = vmatpush3.bf16.msra.mxu0 %v3420_v46  ;;  %2487 = vmatpush3.bf16.msra.mxu1 %v3436_v53 }
  0xc3   : > { %2482 = vmatprep.subr.bf16.mxu0 %v3033_v7  ;;  %2488 = vmatprep.subr.bf16.mxu1 %v3033_v7 }
  0xc4   : > { %2331 = vmatmul.mubr.msk.f32.gmra.mrb[2].mxu0 %vm568_vm2, %v556_v47 }
  0xc5   : > { %2352 = vmatprep.mubr.msk.f32.mxu0 %vm3034_vm3, %v3035_v16 }
  0xc6   : > { %2484 = vmatpush3.bf16.msra.mxu0 %v3432_v52  ;;  %2490 = vmatpush3.bf16.msra.mxu1 %v3446_v56 }
  0xc7   : > { %2491 = vmatprep.subr.bf16.mxu0 %v3033_v7  ;;  %2497 = vmatprep.subr.bf16.mxu1 %v3033_v7 }
  0xc9   : > { %2353 = vmatmul.mubr.msk.f32.vlgmr.msra.gmra.mrb[4].mxu0 %vm568_vm2, %v3450_v57 }
  0xca   : > { %2493 = vmatpush3.bf16.msra.mxu0 %v3373_v11  ;;  %2374 = vmatprep.mubr.msk.f32.mxu0 %vm3034_vm3, %v3035_v16 }
  0xcb   : > { %2494 = vmatprep.subr.bf16.mxu0 %v3033_v7 }
  0xce   : > { %2496 = vmatpush3.bf16.msra.mxu0 %v3380_v17 }
  0xcf   : > { %2503 = vmatprep.subr.bf16.mxu0 %v3033_v7 }
 0x193   : > { %v3396_v21 = vpop.f32.mrb[0].mxu0  ;;  %v758_v22 = vpop.f32.mrb[0].mxu1 }
 0x194   : > { %v647_v23 = vpop.f32.mrb[1].mxu0  ;;  %v2343_v24 = vpop.f32.mrb[1].mxu1  ;;  %v653_v5 = vadd.f32 %v3396_v21, %v3394_v20  ;;  %v686_v21 = vld [vmem:[#allocation3 + $0x8] sm:$0xff] }
 0x195   : > { %v648_v25 = vadd.f32 %v3394_v20, %v647_v23 }
 0x197   : > { %v762_v26 = vadd.f32 %v758_v22, %v648_v25  ;;  %v3473_v0 = vpop.f32.mrb[2].mxu0 }
 0x198   : > { %v3475_v1 = vpop.f32.mrb[3].mxu0 }
 0x199   : > { %2668 = vtanh.f32 %v762_v26  ;;  %v2213_v30 = vmul.f32 -1.442695, %v762_v26 }
 0x19b   : > { %2670 = vpow2.f32 %v2213_v30 }
 0x19c   : > { %v870_v2 = vpop.f32.mrb[4].mxu0 }
 0x19d   : > { %v2354_v3 = vpop.f32.mrb[5].mxu0 }
 0x1a3   : > { %v2669_v28 = vpop.eup %2668 }
 0x1a4   : > { %776 = vrot.lane.b32.xlu0 %v2669_v28, %s3037_s13 }
 0x1a5   : > { %v2671_v31 = vpop.eup %2670 }
 0x1a6   : > { %v766_v32 = vadd.f32 1.0, %v2671_v31  ;;  %v1026_v31 = vstv %s1025_s20 }
 0x1a7   : > { %vm1027_vm6 = vcmp.lt.s32.totalorder %v1026_v31, %v3406_v33 }
 0x1a8   : > { %771 = vrot.lane.b32.xlu0 %v684_v29, %s3037_s13  ;;  %2672 = vrcp.f32 %v766_v32 }
 0x1b2   : > { %v2673_v35 = vpop.eup %2672 }
 0x216   : > { %v777_v36 = vpop.permute.xlu0 %776 }
 0x217   : > { %v779_v37 = vmul.f32 %v2673_v35, %v777_v36 }
 0x219   : > { %781 = vrot.lane.b32.xlu1 %v779_v37, %s3037_s13  ;;  %v1123_v37 = vsel %vm1027_vm6, 1, %v3036_v27 }
 0x21a   : > { %v3413_v39 = vpop.permute.xlu0 %771 }
 0x21b   : > { %v774_v40 = vmul.f32 %v2673_v35, %v3413_v39 }
 0x21d   : > { %793 = vperm.xlu1 %2666, %v791_v38  }
 0x221   : > { %796 = vrot.lane.b32.xlu1 %v681_v19, %s3038_s11 }
 0x28b   : > { %v782_v41 = vpop.permute.xlu1 %781 }
 0x28c   : > { %v3416_v42 = vadd.f32 %v782_v41, %v774_v40 }
 0x28e   : > { %2674 = vtanh.f32 %v3416_v42 }
 0x298   : > { %v2675_v58 = vpop.eup %2674 }
 0x299   : > { %787 = vrot.lane.b32.xlu0 %v2675_v58, %s3037_s13 }
 0x29c   : > { %v3464_v59 = vpop.permute.xlu1 %793 }
 0x29d   : > { %vm795_vm5 = vcmp.eq.s32.totalorder %v3464_v59, 1 }
 0x29e   : > { %v3516_v41 = vsel %vm795_vm5, %v3416_v42, %v3413_v39 }
 0x2a0   : > { %v797_v61 = vpop.permute.xlu1 %796 }
 0x30b   : > { %v788_v60 = vpop.permute.xlu0 %787 }
 0x30c   : > { %v790_v62 = vmul.f32 %v2673_v35, %v788_v60 }
 0x30e   : > { %v3469_v63 = vsel %vm795_vm5, %v790_v62, %v797_v61 }
 0x30f   : > { %875 = vrot.lane.b32.xlu0 %v3469_v63, %s3038_s11 }
 0x381   : > { %v876_v4 = vpop.permute.xlu0 %875 }
 0x382   : > { %2364 = vmatmul.mubr.msk.f32.vlgmr.msra.gmra.mrb[2].mxu1 %vm568_vm2, %v876_v4  ;;  %2375 = vmatmul.mubr.msk.f32.vlgmr.msra.gmra.mrb[6].mxu0 %vm568_vm2, %v876_v4 }
 0x383   : > { %2499 = vmatpush3.bf16.msra.mxu1 %v3420_v46  ;;  %2505 = vmatpush3.bf16.msra.mxu0 %v3436_v53 }
 0x384   : > { %2500 = vmatprep.subr.bf16.mxu1 %v3033_v7  ;;  %2385 = vmatprep.mubr.msk.f32.mxu1 %vm3034_vm3, %v3035_v16 }
 0x385   : > { %2506 = vmatprep.subr.bf16.mxu0 %v3033_v7  ;;  %2396 = vmatprep.mubr.msk.f32.mxu0 %vm3034_vm3, %v3035_v16 }
 0x387   : > { %2502 = vmatpush3.bf16.msra.mxu1 %v3432_v52  ;;  %2508 = vmatpush3.bf16.msra.mxu0 %v3446_v56 }
 0x388   : > { %2509 = vmatprep.subr.bf16.mxu1 %v3033_v7  ;;  %2515 = vmatprep.subr.bf16.mxu0 %v3033_v7 }
 0x455   : > { %v945_v8 = vpop.f32.mrb[2].mxu1  ;;  %v1094_v9 = vpop.f32.mrb[6].mxu0 }
 0x456   : > { %v946_v10 = vadd.f32 %v945_v8, %v870_v2  ;;  %v1098_v12 = vadd.f32 %v1094_v9, %v653_v5  ;;  %v2365_v13 = vpop.f32.mrb[3].mxu1  ;;  %v2376_v14 = vpop.f32.mrb[7].mxu0  ;;  %v658_v8 = vadd.f32 %v3394_v20, %v3475_v1 }
 0x458   : > { %v955_v15 = vadd.f32 %v3496_v6, %v946_v10  ;;  %2676 = vtanh.f32 %v1098_v12  ;;  %v2222_v22 = vmul.f32 -1.442695, %v1098_v12 }
 0x45a   : > { %2678 = vtanh.f32 %v955_v15  ;;  %v2217_v23 = vmul.f32 -1.442695, %v955_v15 }
 0x45b   : > { %2680 = vpow2.f32 %v2222_v22 }
 0x45c   : > { %2682 = vpow2.f32 %v2217_v23 }
 0x462   : > { %v2677_v18 = vpop.eup %2676 }
 0x463   : > { %1108 = vrot.lane.b32.xlu0 %v2677_v18, %s3037_s13 }
 0x464   : > { %v2679_v19 = vpop.eup %2678 }
 0x465   : > { %969 = vrot.lane.b32.xlu1 %v2679_v19, %s3037_s13  ;;  %v2681_v24 = vpop.eup %2680 }
 0x466   : > { %v2683_v25 = vpop.eup %2682  ;;  %v1102_v26 = vadd.f32 1.0, %v2681_v24  ;;  %v1330_v24 = vstv %s1329_s29 }
 0x467   : > { %v959_v28 = vadd.f32 1.0, %v2683_v25  ;;  %vm1331_vm8 = vcmp.lt.s32.totalorder %v1330_v24, %v3406_v33 }
 0x468   : > { %2684 = vrcp.f32 %v1102_v26 }
 0x469   : > { %964 = vrot.lane.b32.xlu1 %v686_v21, %s3037_s13  ;;  %2686 = vrcp.f32 %v959_v28 }
 0x472   : > { %v2685_v29 = vpop.eup %2684 }
 0x473   : > { %v2687_v34 = vpop.eup %2686  ;;  %v1106_v45 = vmul.f32 %v2685_v29, %v3516_v41 }
 0x4d5   : > { %v1109_v30 = vpop.permute.xlu0 %1108 }
 0x4d6   : > { %v1111_v32 = vmul.f32 %v2685_v29, %v1109_v30 }
 0x4d7   : > { %v970_v35 = vpop.permute.xlu1 %969 }
 0x4d8   : > { %v972_v36 = vmul.f32 %v2687_v34, %v970_v35  ;;  %1113 = vrot.lane.b32.xlu1 %v1111_v32, %s3037_s13  ;;  %v1427_v32 = vsel %vm1331_vm8, 1, %v3036_v27 }
 0x4da   : > { %974 = vrot.lane.b32.xlu0 %v972_v36, %s3037_s13 }
 0x4db   : > { %v3509_v38 = vpop.permute.xlu1 %964 }
 0x4dc   : > { %v967_v40 = vmul.f32 %v2687_v34, %v3509_v38 }
 0x4de   : > { %1125 = vperm.xlu0 %2667, %v1123_v37  }
 0x4e2   : > { %984 = vrot.lane.b32.xlu0 %v3450_v57, %s3038_s11 }
 0x54a   : > { %v1114_v43 = vpop.permute.xlu1 %1113 }
 0x54b   : > { %v3521_v48 = vadd.f32 %v1114_v43, %v1106_v45 }
 0x54c   : > { %v975_v44 = vpop.permute.xlu0 %974 }
 0x54d   : > { %v3519_v47 = vadd.f32 %v975_v44, %v967_v40 }
 0x54f   : > { %2688 = vtanh.f32 %v3519_v47 }
 0x550   : > { %2690 = vtanh.f32 %v3521_v48 }
 0x559   : > { %v2689_v49 = vpop.eup %2688 }
 0x55a   : > { %980 = vrot.lane.b32.xlu1 %v2689_v49, %s3037_s13  ;;  %v2691_v50 = vpop.eup %2690 }
 0x55d   : > { %v3527_v39 = vpop.permute.xlu0 %1125 }
 0x55e   : > { %1119 = vrot.lane.b32.xlu1 %v2691_v50, %s3037_s13  ;;  %vm1127_vm7 = vcmp.eq.s32.totalorder %v3527_v39, 1 }
 0x55f   : > { %v3587_v40 = vsel %vm1127_vm7, %v3521_v48, %v3516_v41 }
 0x561   : > { %v985_v51 = vpop.permute.xlu0 %984 }
 0x5cc   : > { %v981_v42 = vpop.permute.xlu1 %980 }
 0x5cd   : > { %v983_v54 = vmul.f32 %v2687_v34, %v981_v42  ;;  %v3578_v34 = vsel %vm795_vm5, %v3519_v47, %v3509_v38 }
 0x5cf   : > { %v3531_v55 = vsel %vm795_vm5, %v983_v54, %v985_v51 }
 0x5d0   : > { %1131 = vrot.lane.b32.xlu1 %v3531_v55, %s3038_s11  ;;  %v1120_v57 = vpop.permute.xlu1 %1119 }
 0x5d1   : > { %v1122_v58 = vmul.f32 %v2685_v29, %v1120_v57 }
 0x5d3   : > { %v3539_v60 = vsel %vm1127_vm7, %v1122_v58, %v3469_v63 }
 0x5d4   : > { %1206 = vrot.lane.b32.xlu0 %v3539_v60, %s3038_s11 }
 0x642   : > { %v1132_v61 = vpop.permute.xlu1 %1131 }
 0x643   : > { %2386 = vmatmul.mubr.msk.f32.vlgmr.msra.gmra.mrb[4].mxu1 %vm568_vm2, %v1132_v61 }
 0x644   : > { %2511 = vmatpush3.bf16.msra.mxu1 %v3373_v11  ;;  %2407 = vmatprep.mubr.msk.f32.mxu1 %vm3034_vm3, %v3035_v16 }
 0x645   : > { %2512 = vmatprep.subr.bf16.mxu1 %v3033_v7 }
 0x646   : > { %v1207_v62 = vpop.permute.xlu0 %1206 }
 0x647   : > { %2397 = vmatmul.mubr.msk.f32.vlgmr.msra.gmra.mrb[8].mxu0 %vm568_vm2, %v1207_v62 }
 0x648   : > { %2514 = vmatpush3.bf16.msra.mxu1 %v3380_v17  ;;  %2517 = vmatpush3.bf16.msra.mxu0 %v3420_v46 }
 0x649   : > { %2521 = vmatprep.subr.bf16.mxu1 %v3033_v7  ;;  %2518 = vmatprep.subr.bf16.mxu0 %v3033_v7 }
 0x64a   : > { %2418 = vmatprep.mubr.msk.f32.mxu0 %vm3034_vm3, %v3035_v16 }
 0x64b   : > { %2408 = vmatmul.mubr.msk.f32.vlgmr.msra.gmra.mrb[6].mxu1 %vm568_vm2, %v1207_v62 }
 0x64c   : > { %2523 = vmatpush3.bf16.msra.mxu1 %v3436_v53  ;;  %2520 = vmatpush3.bf16.msra.mxu0 %v3432_v52 }
 0x64d   : > { %2524 = vmatprep.subr.bf16.mxu1 %v3033_v7  ;;  %2527 = vmatprep.subr.bf16.mxu0 %v3033_v7 }
 0x64e   : > { %2429 = vmatprep.mubr.msk.f32.mxu1 %vm3034_vm3, %v3035_v16 }
 0x650   : > { %2526 = vmatpush3.bf16.msra.mxu1 %v3446_v56 }
 0x651   : > { %2533 = vmatprep.subr.bf16.mxu1 %v3033_v7 }
 0x716   : > { %v1201_v63 = vpop.f32.mrb[4].mxu1 }
 0x717   : > { %v2387_v2 = vpop.f32.mrb[5].mxu1 }
 0x71a   : > { %v1276_v3 = vpop.f32.mrb[8].mxu0 }
 0x71b   : > { %v1277_v4 = vadd.f32 %v1276_v3, %v1201_v63  ;;  %v2398_v5 = vpop.f32.mrb[9].mxu0  ;;  %v663_v63 = vadd.f32 %v3473_v0, %v3394_v20  ;;  %v1634_v0 = vstv %s1633_s27 }
 0x71c   : > { %vm1635_vm10 = vcmp.lt.s32.totalorder %v1634_v0, %v3406_v33 }
 0x71d   : > { %v1280_v9 = vadd.f32 %v3496_v6, %v1277_v4 }
 0x71e   : > { %v1398_v10 = vpop.f32.mrb[6].mxu1 }
 0x71f   : > { %2692 = vtanh.f32 %v1280_v9  ;;  %v1402_v12 = vadd.f32 %v1398_v10, %v658_v8  ;;  %v2409_v13 = vpop.f32.mrb[7].mxu1  ;;  %v2225_v18 = vmul.f32 -1.442695, %v1280_v9 }
 0x721   : > { %2694 = vtanh.f32 %v1402_v12  ;;  %v2228_v19 = vmul.f32 -1.442695, %v1402_v12 }
 0x722   : > { %2696 = vpow2.f32 %v2225_v18  ;;  %v1731_v18 = vsel %vm1635_vm10, 1, %v3036_v27 }
 0x723   : > { %2698 = vpow2.f32 %v2228_v19 }
 0x729   : > { %v2693_v14 = vpop.eup %2692 }
 0x72a   : > { %1290 = vrot.lane.b32.xlu1 %v2693_v14, %s3037_s13 }
 0x72b   : > { %v2695_v15 = vpop.eup %2694 }
 0x72c   : > { %1412 = vrot.lane.b32.xlu0 %v2695_v15, %s3037_s13  ;;  %v2697_v21 = vpop.eup %2696 }
 0x72d   : > { %v2699_v1 = vpop.eup %2698  ;;  %v1284_v22 = vadd.f32 1.0, %v2697_v21 }
 0x72e   : > { %v1406_v23 = vadd.f32 1.0, %v2699_v1 }
 0x72f   : > { %2700 = vrcp.f32 %v1284_v22 }
 0x730   : > { %2702 = vrcp.f32 %v1406_v23 }
 0x739   : > { %v2701_v25 = vpop.eup %2700 }
 0x73a   : > { %v2703_v29 = vpop.eup %2702  ;;  %v1288_v35 = vmul.f32 %v2701_v25, %v3578_v34 }
 0x73b   : > { %v1410_v43 = vmul.f32 %v2703_v29, %v3587_v40 }
 0x79c   : > { %v1291_v26 = vpop.permute.xlu1 %1290 }
 0x79d   : > { %v1293_v28 = vmul.f32 %v2701_v25, %v1291_v26 }
 0x79e   : > { %v1413_v30 = vpop.permute.xlu0 %1412 }
 0x79f   : > { %1295 = vrot.lane.b32.xlu1 %v1293_v28, %s3037_s13  ;;  %v1415_v31 = vmul.f32 %v2703_v29, %v1413_v30 }
 0x7a1   : > { %1417 = vrot.lane.b32.xlu0 %v1415_v31, %s3037_s13 }
 0x7a3   : > { %1429 = vperm.xlu1 %2666, %v1427_v32  }
 0x811   : > { %v1296_v36 = vpop.permute.xlu1 %1295 }
 0x812   : > { %v3581_v37 = vadd.f32 %v1296_v36, %v1288_v35 }
 0x813   : > { %v1418_v44 = vpop.permute.xlu0 %1417 }
 0x814   : > { %2704 = vtanh.f32 %v3581_v37  ;;  %v3591_v45 = vadd.f32 %v1418_v44, %v1410_v43  ;;  %v1306_v19 = vsel %vm1127_vm7, %v3581_v37, %v3578_v34 }
 0x816   : > { %2706 = vtanh.f32 %v3591_v45 }
 0x81e   : > { %v2705_v38 = vpop.eup %2704 }
 0x81f   : > { %1301 = vrot.lane.b32.xlu0 %v2705_v38, %s3037_s13 }
 0x820   : > { %v2707_v47 = vpop.eup %2706 }
 0x821   : > { %1423 = vrot.lane.b32.xlu1 %v2707_v47, %s3037_s13 }
 0x822   : > { %v3596_v49 = vpop.permute.xlu1 %1429 }
 0x823   : > { %vm1431_vm9 = vcmp.eq.s32.totalorder %v3596_v49, 1 }
 0x824   : > { %v3650_v33 = vsel %vm1431_vm9, %v3591_v45, %v3587_v40 }
 0x891   : > { %v1302_v50 = vpop.permute.xlu0 %1301 }
 0x892   : > { %v1304_v41 = vmul.f32 %v2701_v25, %v1302_v50 }
 0x893   : > { %v1424_v48 = vpop.permute.xlu1 %1423 }
 0x894   : > { %v3601_v42 = vsel %vm1127_vm7, %v1304_v41, %v3531_v55  ;;  %v1426_v51 = vmul.f32 %v2703_v29, %v1424_v48 }
 0x895   : > { %1435 = vrot.lane.b32.xlu0 %v3601_v42, %s3038_s11 }
 0x896   : > { %v3609_v54 = vsel %vm1431_vm9, %v1426_v51, %v3539_v60 }
 0x897   : > { %1510 = vrot.lane.b32.xlu1 %v3609_v54, %s3038_s11 }
 0x907   : > { %v1436_v57 = vpop.permute.xlu0 %1435 }
 0x908   : > { %2419 = vmatmul.mubr.msk.f32.vlgmr.msra.gmra.mrb[10].mxu0 %vm568_vm2, %v1436_v57 }
 0x909   : > { %2529 = vmatpush3.bf16.msra.mxu0 %v3373_v11  ;;  %2440 = vmatprep.mubr.msk.f32.mxu0 %vm3034_vm3, %v3035_v16  ;;  %v1511_v58 = vpop.permute.xlu1 %1510 }
 0x90a   : > { %2530 = vmatprep.subr.bf16.mxu0 %v3033_v7  ;;  %2430 = vmatmul.mubr.msk.f32.vlgmr.msra.gmra.mrb[8].mxu1 %vm568_vm2, %v1511_v58 }
 0x90b   : > { %2535 = vmatpush3.bf16.msra.mxu1 %v3420_v46  ;;  %2451 = vmatprep.mubr.msk.f32.mxu1 %vm3034_vm3, %v3035_v16 }
 0x90c   : > { %2536 = vmatprep.subr.bf16.mxu1 %v3033_v7 }
 0x90d   : > { %2532 = vmatpush3.bf16.msra.mxu0 %v3380_v17 }
 0x90e   : > { %2539 = vmatprep.subr.bf16.mxu0 %v3033_v7 }
 0x90f   : > { %2538 = vmatpush3.bf16.msra.mxu1 %v3432_v52 }
 0x910   : > { %2441 = vmatmul.mubr.msk.f32.vlgmr.msra.gmra.mrb[12].mxu0 %vm568_vm2, %v1511_v58 }
 0x911   : > { %2541 = vmatpush3.bf16.msra.mxu0 %v3436_v53  ;;  %2462 = vmatprep.mubr.msk.f32.mxu0 %vm3034_vm3, %v3035_v16 }
 0x912   : > { %2542 = vmatprep.subr.bf16.mxu0 %v3033_v7 }
 0x915   : > { %2544 = vmatpush3.bf16.msra.mxu0 %v3446_v56 }
 0x9db   : > { %v1505_v11 = vpop.f32.mrb[10].mxu0 }
 0x9dc   : > { %v2420_v46 = vpop.f32.mrb[11].mxu0 }
 0x9dd   : > { %v1580_v17 = vpop.f32.mrb[8].mxu1 }
 0x9de   : > { %v1581_v60 = vadd.f32 %v1580_v17, %v1505_v11  ;;  %v2431_v61 = vpop.f32.mrb[9].mxu1  ;;  %v2218_v11 = vld [vmem:[%s3901_s0] ss:$0 sm:$0xff] }
 0x9e0   : > { %v1584_v62 = vadd.f32 %v3496_v6, %v1581_v60 }
 0x9e2   : > { %2708 = vtanh.f32 %v1584_v62  ;;  %v2231_v56 = vmul.f32 -1.442695, %v1584_v62 }
 0x9e3   : > { %v1702_v52 = vpop.f32.mrb[12].mxu0 }
 0x9e4   : > { %v1706_v53 = vadd.f32 %v1702_v52, %v663_v63  ;;  %v2442_v2 = vpop.f32.mrb[13].mxu0 }
 0x9e6   : > { %2710 = vtanh.f32 %v1706_v53  ;;  %v2234_v3 = vmul.f32 -1.442695, %v1706_v53 }
 0x9e7   : > { %2712 = vpow2.f32 %v2231_v56 }
 0x9e8   : > { %2714 = vpow2.f32 %v2234_v3 }
 0x9ec   : > { %v2709_v16 = vpop.eup %2708 }
 0x9ed   : > { %1594 = vrot.lane.b32.xlu0 %v2709_v16, %s3037_s13 }
 0x9f0   : > { %v2711_v7 = vpop.eup %2710 }
 0x9f1   : > { %1716 = vrot.lane.b32.xlu1 %v2711_v7, %s3037_s13  ;;  %v2713_v4 = vpop.eup %2712 }
 0x9f2   : > { %v2715_v5 = vpop.eup %2714  ;;  %v1588_v8 = vadd.f32 1.0, %v2713_v4 }
 0x9f3   : > { %v1710_v20 = vadd.f32 1.0, %v2715_v5 }
 0x9f4   : > { %2716 = vrcp.f32 %v1588_v8 }
 0x9f5   : > { %2718 = vrcp.f32 %v1710_v20 }
 0x9fe   : > { %v2717_v9 = vpop.eup %2716 }
 0x9ff   : > { %v2719_v13 = vpop.eup %2718  ;;  %v1592_v21 = vmul.f32 %v2717_v9, %v1306_v19 }
 0xa00   : > { %v1714_v23 = vmul.f32 %v2719_v13, %v3650_v33 }
 0xa5f   : > { %v1595_v10 = vpop.permute.xlu0 %1594 }
 0xa60   : > { %v1597_v12 = vmul.f32 %v2717_v9, %v1595_v10 }
 0xa62   : > { %1599 = vrot.lane.b32.xlu0 %v1597_v12, %s3037_s13  ;;  %v2219_v12 = vld [vmem:[#allocation6] ss:$0 sm:$0xff] }
 0xa63   : > { %v1717_v14 = vpop.permute.xlu1 %1716 }
 0xa64   : > { %v1719_v15 = vmul.f32 %v2719_v13, %v1717_v14 }
 0xa66   : > { %1721 = vrot.lane.b32.xlu1 %v1719_v15, %s3037_s13  ;;  %1733 = vperm.xlu0 %2667, %v1731_v18  }
 0xad4   : > { %v1600_v1 = vpop.permute.xlu0 %1599 }
 0xad5   : > { %v1602_v22 = vadd.f32 %v1600_v1, %v1592_v21 }
 0xad7   : > { %2720 = vtanh.f32 %v1602_v22 }
 0xad8   : > { %v1722_v27 = vpop.permute.xlu1 %1721 }
 0xad9   : > { %v3653_v24 = vadd.f32 %v1722_v27, %v1714_v23 }
 0xadb   : > { %2722 = vtanh.f32 %v3653_v24 }
 0xae1   : > { %v2721_v25 = vpop.eup %2720 }
 0xae2   : > { %1605 = vrot.lane.b32.xlu1 %v2721_v25, %s3037_s13 }
 0xae5   : > { %v2723_v26 = vpop.eup %2722  ;;  %v3658_v28 = vpop.permute.xlu0 %1733 }
 0xae6   : > { %1727 = vrot.lane.b32.xlu0 %v2723_v26, %s3037_s13  ;;  %vm1735_vm11 = vcmp.eq.s32.totalorder %v3658_v28, 1 }
 0xae7   : > { %v1737_v59 = vsel %vm1735_vm11, %v3653_v24, %v3650_v33 }
 0xb54   : > { %v1606_v29 = vpop.permute.xlu1 %1605 }
 0xb55   : > { %v1608_v30 = vmul.f32 %v2717_v9, %v1606_v29 }
 0xb57   : > { %v3663_v32 = vsel %vm1431_vm9, %v1608_v30, %v3601_v42 }
 0xb58   : > { %v1728_v31 = vpop.permute.xlu0 %1727  ;;  %1739 = vrot.lane.b32.xlu1 %v3663_v32, %s3038_s11 }
 0xb59   : > { %v1730_v34 = vmul.f32 %v2719_v13, %v1728_v31 }
 0xb5b   : > { %v1736_v35 = vsel %vm1735_vm11, %v1730_v34, %v3609_v54 }
 0xb5c   : > { %1814 = vrot.lane.b32.xlu0 %v1736_v35, %s3038_s11 }
 0xbca   : > { %v1740_v36 = vpop.permute.xlu1 %1739 }
 0xbcb   : > { %2452 = vmatmul.mubr.msk.f32.vlgmr.msra.gmra.mrb[10].mxu1 %vm568_vm2, %v1740_v36 }
 0xbce   : > { %v1815_v37 = vpop.permute.xlu0 %1814 }
 0xbcf   : > { %1958 = vst.msk [vmem:[#allocation2] sm:$0xff] %vm568_vm2, %v1815_v37  ;;  %2463 = vmatmul.mubr.msk.f32.vlgmr.msra.gmra.mrb[14].mxu0 %vm568_vm2, %v1815_v37 }
 0xc9e   : > { %v1809_v40 = vpop.f32.mrb[10].mxu1 }
 0xc9f   : > { %v2453_v43 = vpop.f32.mrb[11].mxu1 }
 0xca2   : > { %v1884_v44 = vpop.f32.mrb[14].mxu0 }
 0xca3   : > { %v1885_v45 = vadd.f32 %v1884_v44, %v1809_v40  ;;  %v2464_v38 = vpop.f32.mrb[15].mxu0 }
 0xca5   : > { %v1888_v47 = vadd.f32 %v3496_v6, %v1885_v45  ;;  %v3684_v6 = vsel %vm1431_vm9, %v1602_v22, %v1306_v19 }
 0xca7   : > { %2724 = vtanh.f32 %v1888_v47  ;;  %v2237_v41 = vmul.f32 -1.442695, %v1888_v47 }
 0xca9   : > { %2726 = vpow2.f32 %v2237_v41 }
 0xcb1   : > { %v2725_v50 = vpop.eup %2724 }
 0xcb2   : > { %1898 = vrot.lane.b32.xlu1 %v2725_v50, %s3037_s13 }
 0xcb3   : > { %v2727_v48 = vpop.eup %2726 }
 0xcb4   : > { %v1892_v51 = vadd.f32 1.0, %v2727_v48 }
 0xcb6   : > { %2728 = vrcp.f32 %v1892_v51 }
 0xcc0   : > { %v2729_v54 = vpop.eup %2728 }
 0xcc1   : > { %v1896_v46 = vmul.f32 %v2729_v54, %v3684_v6 }
 0xd24   : > { %v1899_v57 = vpop.permute.xlu1 %1898 }
 0xd25   : > { %v1901_v58 = vmul.f32 %v2729_v54, %v1899_v57 }
 0xd27   : > { %1903 = vrot.lane.b32.xlu0 %v1901_v58, %s3037_s13 }
 0xd2b   : > { %994 = vrot.lane.b32.xlu0 %v2218_v11, %s3038_s11 }
 0xd99   : > { %v1904_v17 = vpop.permute.xlu0 %1903 }
 0xd9a   : > { %v3687_v60 = vadd.f32 %v1904_v17, %v1896_v46 }
 0xd9c   : > { %2730 = vtanh.f32 %v3687_v60  ;;  %v1914_v39 = vsel %vm1735_vm11, %v3687_v60, %v3684_v6 }
 0xd9d   : > { %v995_v61 = vpop.permute.xlu0 %994 }
 0xd9e   : > { %v1307_v62 = vmul.f32 %v3601_v42, %v995_v61  ;;  %v997_v52 = vmul.f32 %v995_v61, %v3531_v55  ;;  %v1611_v53 = vmul.f32 %v3663_v32, %v995_v61 }
 0xda0   : > { %1309 = vrot.lane.b32.xlu0 %v1307_v62, %s3038_s11 }
 0xda6   : > { %v2731_v63 = vpop.eup %2730 }
 0xda7   : > { %1909 = vrot.lane.b32.xlu1 %v2731_v63, %s3037_s13  ;;  %s3039_s13 = smov 96  }
 0xdab   : > { %999 = vrot.lane.b32.xlu1 %v997_v52, %s3038_s11 }
 0xdaf   : > { %1613 = vrot.lane.b32.xlu1 %v1611_v53, %s3038_s11 }
 0xe12   : > { %v1310_v5 = vpop.permute.xlu0 %1309 }
 0xe13   : > { %v1312_v8 = vsel %vm568_vm2, %v1310_v5, 0.0 }
 0xe19   : > { %v1910_v2 = vpop.permute.xlu1 %1909 }
 0xe1a   : > { %v1912_v16 = vmul.f32 %v2729_v54, %v1910_v2 }
 0xe1c   : > { %v3700_v7 = vsel %vm1735_vm11, %v1912_v16, %v3663_v32 }
 0xe1d   : > { %v1000_v56 = vpop.permute.xlu1 %999  ;;  %v1915_v3 = vmul.f32 %v3700_v7, %v995_v61 }
 0xe1e   : > { %v1002_v4 = vsel %vm568_vm2, %v1000_v56, 0.0 }
 0xe1f   : > { %1917 = vrot.lane.b32.xlu0 %v1915_v3, %s3038_s11  ;;  %1003 = vadd.xlane.f32.xlu1 %v1002_v4 }
 0xe21   : > { %v1614_v20 = vpop.permute.xlu1 %1613 }
 0xe22   : > { %v1616_v0 = vsel %vm568_vm2, %v1614_v20, 0.0 }
 0xe3e   : > { %1313 = vadd.xlane.f32.xlu0 %v1312_v8 }
 0xe42   : > { %1617 = vadd.xlane.f32.xlu0 %v1616_v0 }
 0xe91   : > { %v1918_v9 = vpop.permute.xlu0 %1917 }
 0xe92   : > { %v1920_v10 = vsel %vm568_vm2, %v1918_v9, 0.0 }
 0xe93   : > { %1921 = vadd.xlane.f32.xlu1 %v1920_v10 }
 0xeac   : > { %v1004_v13 = vpop.xlane.xlu1 %1003 }
 0xead   : > { %v1011_v14 = vadd.f32 %v2219_v12, %v1004_v13 }
 0xeaf   : > { %v2220_v15 = vmul.f32 -1.442695, %v1011_v14 }
 0xeb1   : > { %2732 = vpow2.f32 %v2220_v15 }
 0xebb   : > { %v2733_v18 = vpop.eup %2732 }
 0xebc   : > { %v1015_v19 = vadd.f32 1.0, %v2733_v18 }
 0xebe   : > { %2734 = vrcp.f32 %v1015_v19 }
 0xec8   : > { %v2735_v21 = vpop.eup %2734 }
 0xec9   : > { %1020 = vperm.xlu0 %2667, %v2735_v21  }
 0xecb   : > { %v1314_v1 = vpop.xlane.xlu0 %1313 }
 0xecc   : > { %v1315_v22 = vadd.f32 %v2219_v12, %v1314_v1 }
 0xece   : > { %v2226_v23 = vmul.f32 -1.442695, %v1315_v22 }
 0xecf   : > { %v1618_v27 = vpop.xlane.xlu0 %1617 }
 0xed0   : > { %2736 = vpow2.f32 %v2226_v23  ;;  %v1619_v25 = vadd.f32 %v2219_v12, %v1618_v27 }
 0xed2   : > { %v2232_v26 = vmul.f32 -1.442695, %v1619_v25 }
 0xed4   : > { %2738 = vpow2.f32 %v2232_v26 }
 0xeda   : > { %v2737_v29 = vpop.eup %2736 }
 0xedb   : > { %v1319_v30 = vadd.f32 1.0, %v2737_v29 }
 0xedd   : > { %2740 = vrcp.f32 %v1319_v30 }
 0xede   : > { %v2739_v31 = vpop.eup %2738 }
 0xedf   : > { %v1623_v34 = vadd.f32 1.0, %v2739_v31 }
 0xee1   : > { %2742 = vrcp.f32 %v1623_v34 }
 0xee7   : > { %v2741_v35 = vpop.eup %2740 }
 0xee8   : > { %1324 = vperm.xlu1 %2666, %v2741_v35  }
 0xeeb   : > { %v2743_v36 = vpop.eup %2742 }
 0xeec   : > { %1628 = vperm.xlu1 %2666, %v2743_v36  }
 0xf20   : > { %v1922_v37 = vpop.xlane.xlu1 %1921 }
 0xf21   : > { %v1923_v40 = vadd.f32 %v2219_v12, %v1922_v37 }
 0xf23   : > { %v2238_v43 = vmul.f32 -1.442695, %v1923_v40 }
 0xf25   : > { %2744 = vpow2.f32 %v2238_v43 }
 0xf2f   : > { %v2745_v44 = vpop.eup %2744 }
 0xf30   : > { %v1927_v45 = vadd.f32 1.0, %v2745_v44 }
 0xf32   : > { %2746 = vrcp.f32 %v1927_v45 }
 0xf3c   : > { %v2747_v38 = vpop.eup %2746 }
 0xf3d   : > { %1932 = vperm.xlu0 %2667, %v2747_v38  }
 0xf48   : > { %v1021_v47 = vpop.permute.xlu0 %1020 }
 0xf49   : > { %v1023_v50 = vmul.f32 %v1021_v47, %v3531_v55 }
 0xf4b   : > { %v1024_v41 = vsel %vm795_vm5, %v1023_v50, 0.0 }
 0xf4c   : > { %1941 = vrot.lane.b32.xlu1 %v1024_v41, %s3038_s11 }
 0xf67   : > { %v1325_v48 = vpop.permute.xlu1 %1324 }
 0xf68   : > { %v1327_v51 = vmul.f32 %v1325_v48, %v3601_v42 }
 0xf6a   : > { %v1328_v54 = vsel %vm1127_vm7, %v1327_v51, 0.0 }
 0xf6b   : > { %1943 = vrot.lane.b32.xlu0 %v1328_v54, %s3038_s11  ;;  %v1629_v57 = vpop.permute.xlu1 %1628 }
 0xf6c   : > { %v1631_v58 = vmul.f32 %v1629_v57, %v3663_v32 }
 0xf6e   : > { %v1632_v55 = vsel %vm1431_vm9, %v1631_v58, 0.0 }
 0xf6f   : > { %1945 = vrot.lane.b32.xlu1 %v1632_v55, %s3038_s11 }
 0xf73   : > { %1960 = vrot.lane.b32.xlu1 %v1737_v59, %s3039_s13 }
 0xf77   : > { %1970 = vrot.lane.b32.xlu1 %v1914_v39, %s3039_s13 }
 0xfbc   : > { %v1933_v42 = vpop.permute.xlu0 %1932 }
 0xfbd   : > { %v1935_v49 = vmul.f32 %v1933_v42, %v3700_v7 }
 0xfbe   : > { %v1942_v32 = vpop.permute.xlu1 %1941 }
 0xfbf   : > { %1953 = vst.msk [vmem:[%s3360_s25] sm:$0xff] %vm568_vm2, %v1942_v32  ;;  %v1936_v11 = vsel %vm1735_vm11, %v1935_v49, 0.0 }
 0xfc0   : > { %1947 = vrot.lane.b32.xlu0 %v1936_v11, %s3038_s11 }
 0xfc4   : > { %1965 = vrot.lane.b32.xlu0 %v3700_v7, %s3038_s11 }
 0xfdd   : > { %v1944_v33 = vpop.permute.xlu0 %1943 }
 0xfde   : > { %1954 = vst.msk [vmem:[%s3360_s25 + $0x8] sm:$0xff] %vm568_vm2, %v1944_v33 }
 0xfe1   : > { %v1946_v24 = vpop.permute.xlu1 %1945 }
 0xfe2   : > { %1955 = vst.msk [vmem:[%s3360_s25 + $0x10] sm:$0xff] %vm568_vm2, %v1946_v24 }
 0xfe5   : > { %v1961_v6 = vpop.permute.xlu1 %1960 }
 0xfe6   : > { %1963 = vst.msk [vmem:[#allocation3] sm:$0xff] %vm568_vm2, %v1961_v6 }
 0xfe9   : > { %v1971_v46 = vpop.permute.xlu1 %1970 }
 0xfea   : > { %1973 = vst.msk [vmem:[#allocation3 + $0x8] sm:$0xff] %vm568_vm2, %v1971_v46 }
0x1032   : > { %v1948_v17 = vpop.permute.xlu0 %1947 }
0x1033   : > { %1956 = vst.msk [vmem:[%s3360_s25 + $0x18] sm:$0xff] %vm568_vm2, %v1948_v17 }
0x1036   : > { %v1966_v28 = vpop.permute.xlu0 %1965 }
0x1037   : > { %1968 = vst.msk [vmem:[#allocation2 + $0x8] sm:$0xff] %vm568_vm2, %v1966_v28 }
0x1038 PF: > { %p2239_p10 = scmp.ne.s32.totalorder %s3014_s16, 1 }
0x1039   : > { %v1978_v60 = vld [vmem:[#allocation2] sm:$0xff] (!%p2239_p10)  ;;  %vm1980_vm12 = vcmask (!%p2239_p10), 261120   ;;  %v1983_v62 = vld [vmem:[#allocation3] sm:$0xff] (!%p2239_p10)  ;;  %v1984_v63 = vld [vmem:[#allocation3 + $0x8] sm:$0xff] (!%p2239_p10) }
0x103a   : > { %1977 = sbr.rel (%p2239_p10) target bundleno = 4161 (0x1041), region = 92  ;;  %1981 = vst.msk [vmem:[#allocation16] sm:$0xff] (!%p2239_p10), %vm1980_vm12, %v1978_v60  ;;  %1985 = vst.msk [vmem:[#allocation18] sm:$0xff] (!%p2239_p10), %vm1980_vm12, %v1983_v62 }
0x103b   : > { %1986 = vst.msk [vmem:[#allocation18 + $0x8] sm:$0xff] (!%p2239_p10), %vm1980_vm12, %v1984_v63 }
0x103e   : > { %v1979_v61 = vld [vmem:[#allocation2 + $0x8] sm:$0xff] (!%p2239_p10) }
0x103f   : > { %1982 = vst.msk [vmem:[#allocation16 + $0x8] sm:$0xff] (!%p2239_p10), %vm1980_vm12, %v1979_v61 }
0x1041 PF: > { %s3040_s11 = smov [#allocation16]   ;;  %s2250_s24 = sshll.u32 %s3014_s16, 9 }
0x1042   : > { %s2017_s21 = sshll.u32 %s3040_s11, 4  ;;  %p3902_p0 = scmp.ne.s32.totalorder %s3885_s22, 0  ;;  %s2018_s21 = int_to_ptr.vmem [resolvable:$true] %s2017_s21 }
0x1043   : > { %s2874_s30 = scalar_lea.vmem %s2018_s21, 256  ;;  %p2881_p7 = scmp.lt.s32.totalorder %s2018_s21, %s2018_s21 }
0x1044   : > { %p2875_p12 = scmp.ne.s32.totalorder %s2018_s21, %s2874_s30  ;;  %p2882_p13 = scmp.lt.s32.totalorder %s2874_s30, %s2874_s30 }
0x1046   : > { %p2876_p5 = pnand %p2875_p12, %p3902_p0  ;;  %p2883_p3 = por %p2882_p13, %p2881_p7 }
0x1048   : > { %p2877_p9 = pneg %p2876_p5 }
0x104a   : > { %p2884_p6 = pnand %p2883_p3, %p2877_p9 }
0x104c   : > { %2887 = shalt.err (!%p2884_p6)
}
0x104d   : > { %s3903_s20 = sld [smem:[#allocation32_spill]] }
0x1053   : > { %s2888_s29 = scalar_lea.hbm %s3903_s20, 256 }
0x1054   : > { %p2889_p2 = scmp.ne.s32.totalorder %s3903_s20, %s2888_s29  ;;  %p2894_p8 = scmp.lt.u32.totalorder %s2888_s29, %s3903_s20 }
0x1056   : > { %p2890_p4 = pnand %p2889_p2, %p3902_p0 }
0x1058   : > { %p2891_p11 = pneg %p2890_p4 }
0x105a   : > { %p2896_p10 = pnand %p2894_p8, %p2891_p11 }
0x105c   : > { %2899 = shalt.err (!%p2896_p10)
}
0x105d   : > { %s3041_s0 = smov 128   ;;  %s3042_s13 = smov 8  }
0x105e   : > { %2561 = dma.vmem_to_hbm [thread:$0]  (%p3902_p0), %s2018_s21, 256, %s3903_s20, [#allocation17], %s3041_s0, %s3041_s0, %s3042_s13  }
0x105f   : > { %s3904_s27 = sld [smem:[#allocation31_spill]]  ;;  %s2002_s23 = sshll.u32 %s3360_s25, 4  ;;  %s3774_s23 = int_to_ptr.vmem [resolvable:$true] %s2002_s23 }
0x1060   : > { %s1988_s16 = scalar_lea.sflag [#allocation9], %s3342_s12  ;;  %s2900_s9 = scalar_lea.vmem %s3774_s23, 512 }
0x1061   : > { %p2901_p12 = scmp.ne.s32.totalorder %s3774_s23, %s2900_s9  ;;  %s3043_s1 = smov [#allocation15]  }
0x1062   : > { %s2904_s11 = sshll.u32 %s3043_s1, 4  ;;  %s2905_s11 = int_to_ptr.vmem [resolvable:$false] %s2904_s11 }
0x1063   : > { %p2902_p5 = pnand %p2901_p12, %p3281_p1  ;;  %s2906_s21 = scalar_lea.vmem %s2905_s11, 1024 }
0x1064   : > { %p2907_p7 = scmp.lt.s32.totalorder %s3774_s23, %s2905_s11  ;;  %p2908_p13 = scmp.lt.s32.totalorder %s2906_s21, %s2900_s9 }
0x1065   : > { %s3771_s29 = scalar_lea.hbm %s3904_s27, %s2250_s24  ;;  %p2903_p9 = pneg %p2902_p5 }
0x1066   : > { %p2909_p3 = por %p2908_p13, %p2907_p7 }
0x1068   : > { %p2910_p6 = pnand %p2909_p3, %p2903_p9 }
0x106a   : > { %2913 = shalt.err (!%p2910_p6)
}
0x106b   : > { %s2914_s25 = scalar_lea.hbm %s3771_s29, 512  ;;  %s2918_s1 = scalar_lea.hbm %s3904_s27, 1024 }
0x106c   : > { %p2915_p2 = scmp.ne.s32.totalorder %s3771_s29, %s2914_s25  ;;  %p2919_p8 = scmp.lt.u32.totalorder %s3771_s29, %s3904_s27 }
0x106d   : > { %p2920_p10 = scmp.lt.u32.totalorder %s2918_s1, %s2914_s25  ;;  %p2922_p5 = scmp.lt.u32.totalorder %s2914_s25, %s3771_s29 }
0x106e   : > { %p2916_p4 = pnand %p2915_p2, %p3281_p1 }
0x106f   : > { %p2921_p12 = por %p2920_p10, %p2919_p8 }
0x1070   : > { %p2917_p11 = pneg %p2916_p4 }
0x1071   : > { %p2923_p9 = por %p2922_p5, %p2921_p12 }
0x1073   : > { %p2924_p7 = pnand %p2923_p9, %p2917_p11 }
0x1075   : > { %2927 = shalt.err (!%p2924_p7)
}
0x1076   : > { %2559 = dma.vmem_to_hbm [thread:$0]  (%p3281_p1), %s3774_s23, 512, %s3771_s29, %s1988_s16, %s3041_s0, %s3041_s0, %s3042_s13  }
0x1077   : > { %s3044_s9 = smov [#allocation18]  }
0x1078   : > { %s2032_s11 = sshll.u32 %s3044_s9, 4  ;;  %s2033_s11 = int_to_ptr.vmem [resolvable:$true] %s2032_s11 }
0x1079   : > { %s2928_s21 = scalar_lea.vmem %s2033_s11, 256  ;;  %p2935_p2 = scmp.lt.s32.totalorder %s2033_s11, %s2033_s11 }
0x107a   : > { %p2929_p13 = scmp.ne.s32.totalorder %s2033_s11, %s2928_s21  ;;  %p2936_p4 = scmp.lt.s32.totalorder %s2928_s21, %s2928_s21 }
0x107c   : > { %p2930_p3 = pnand %p2929_p13, %p3902_p0  ;;  %p2937_p11 = por %p2936_p4, %p2935_p2 }
0x107e   : > { %p2931_p6 = pneg %p2930_p3 }
0x1080   : > { %p2938_p8 = pnand %p2937_p11, %p2931_p6 }
0x1082   : > { %2941 = shalt.err (!%p2938_p8)
}
0x1083   : > { %s3905_s12 = sld [smem:[#allocation33_spill]] }
0x1089   : > { %s2942_s24 = scalar_lea.hbm %s3905_s12, 256 }
0x108a   : > { %p2943_p1 = scmp.ne.s32.totalorder %s3905_s12, %s2942_s24  ;;  %p2948_p5 = scmp.lt.u32.totalorder %s2942_s24, %s3905_s12 }
0x108c   : > { %p2944_p10 = pnand %p2943_p1, %p3902_p0 }
0x108e   : > { %p2945_p12 = pneg %p2944_p10 }
0x1090   : > { %p2950_p9 = pnand %p2948_p5, %p2945_p12 }
0x1092   : > { %2953 = shalt.err (!%p2950_p9)
}
0x1093   : > { %2563 = dma.vmem_to_hbm [thread:$0]  (%p3902_p0), %s2033_s11, 256, %s3905_s12, [#allocation17], %s3041_s0, %s3041_s0, %s3042_s13  }
0x1094   : > { %2993 = dma.done.wait (%p3902_p0), [#allocation17], 512  }
0x1095   : > { %2995 = vsyncadd (%p3902_p0), [#allocation17], 4294966784 }
0x1096 PF: > { %s3906_s19 = sld [smem:[#allocation25_spill]]  ;;  %s3907_s9 = sld [smem:[#allocation26_spill]] }
0x1097   : > { %p3909_p13 = scmp.ge.s32.totalorder %s3022_s18, 2 }
0x109c   : > { %s2055_s21 = sand.u32 1, %s3906_s19   ;;  %p3908_p7 = scmp.ne.s32.totalorder %s3907_s9, 0 }
0x109d   : > { %s2056_s8 = scalar_lea.sflag [#allocation9], %s2055_s21 }
0x109e   : > { %p2584_p3 = pnand %p3909_p13, %p3908_p7 }
0x10a0   : > { %2997 = dma.done.wait (!%p2584_p3), %s2056_s8, 512  }
0x10a1   : > { %2999 = vsyncadd (!%p2584_p3), %s2056_s8, 4294966784  ;;  %s41_s18 = sadd.s32 1, %s3022_s18   ;;  %s3910_s0 = smov %s3006_s10 }
0x10a2   : > { %p38_p6 = scmp.ge.s32.totalorder %s41_s18, 4   ;;  %s3911_s10 = smov %s3010_s15 }
0x10a3   : > { %s3912_s15 = smov %s3293_s26  ;;  %s3913_s16 = smov %s3018_s17 }
0x10a4   : > { %s3914_s17 = smov %s3916_s28  ;;  %40 = sbr.rel (!%p38_p6) target bundleno = 26 (0x1a), region = 156 }
0x10ab   :  { %2061 = vsyncpa [#allocation8], 1 }
0x10ac   :  { %2063 = vsyncpa [#allocation8 + $0x1], 1 }
0x10ad   :  { %2064 = vsyncpa [#allocation11], 1 }
0x10ae   :  { %2065 = vsyncpa [#allocation14], 1 }
0x10af   :  { %2066 = vsyncpa [#allocation9], 1 }
0x10b0   :  { %2068 = vsyncpa [#allocation9 + $0x1], 1 }
0x10b1   :  { %2069 = vsyncpa [#allocation17], 1 }

</bundles_post_ra>
